<compile_context>
chip_gen: v5e
topology: v5e:2x2
jax: 0.10.0
libtpu: 0.0.40
codegen_flags: <defaults>
</compile_context>

<pallas_src>
import jax
import jax.numpy as jnp
from jax.experimental import pallas as pl
from jax.experimental.pallas import tpu as pltpu


def _round_up(x, m):
    return ((x + m - 1) // m) * m


def _mlp_kernel(x_ref,
                w1_ref, b1_ref,
                w2_ref, b2_ref,
                w3_ref, b3_ref,
                w4_ref, b4_ref,
                w5_ref, b5_ref,
                o_ref):
    """Fused MLP: Lin(512) ReLU Lin(256) ReLU Lin(128) ReLU Lin(64) Lin(C_pad).

    bf16 MXU inputs, f32 accumulation, f32 bias/ReLU on the VPU, re-cast to
    bf16 before the next MXU op.
    """
    x = x_ref[...]  # (tile_b, F) bf16

    h = jnp.dot(x, w1_ref[...], preferred_element_type=jnp.float32) + b1_ref[...]
    h = jnp.maximum(h, 0.0).astype(jnp.bfloat16)

    h = jnp.dot(h, w2_ref[...], preferred_element_type=jnp.float32) + b2_ref[...]
    h = jnp.maximum(h, 0.0).astype(jnp.bfloat16)

    h = jnp.dot(h, w3_ref[...], preferred_element_type=jnp.float32) + b3_ref[...]
    h = jnp.maximum(h, 0.0).astype(jnp.bfloat16)

    h = jnp.dot(h, w4_ref[...], preferred_element_type=jnp.float32) + b4_ref[...]
    # NOTE: no ReLU between Linear(128,64) and the final Linear in the
    # reference module (only Dropout, which is identity at inference).
    h = h.astype(jnp.bfloat16)

    out = jnp.dot(h, w5_ref[...], preferred_element_type=jnp.float32) + b5_ref[...]
    o_ref[...] = out.astype(o_ref.dtype)


def _choose_tile_b(B, requested):
    """Pick a sublane/bf16-friendly batch tile.

    Clamp to the (rounded-up) batch, and split large batches into >=2 grid
    steps so v7x's two TensorCores both get work.
    """
    tb = min(requested, _round_up(B, 16))
    if B > 128 and _round_up(B, tb) // tb < 2:
        tb = min(requested, _round_up(pl.cdiv(B, 2), 16))
    return max(16, tb)


def mlp_forward(x_flat, params, *, tile_b=256):
    """Run the fused MLP kernel over the batch dimension.

    x_flat: (B, input_size) float array
    params: dict of w1..w5 with shape (in, out) and b1..b5 with shape (1, out)
    """
    B, F = x_flat.shape
    num_classes = params["w5"].shape[1]
    n_pad = _round_up(num_classes, 128)          # lane-dense output width

    tb = _choose_tile_b(B, tile_b)
    B_pad = _round_up(B, tb)
    grid = (B_pad // tb,)

    # bf16 activations / weights; f32 biases (added post-accumulation).
    x_bf = x_flat.astype(jnp.bfloat16)
    if B_pad != B:
        x_bf = jnp.pad(x_bf, ((0, B_pad - B), (0, 0)))

    w1 = params["w1"].astype(jnp.bfloat16)
    w2 = params["w2"].astype(jnp.bfloat16)
    w3 = params["w3"].astype(jnp.bfloat16)
    w4 = params["w4"].astype(jnp.bfloat16)
    w5 = params["w5"].astype(jnp.bfloat16)
    b1 = params["b1"].astype(jnp.float32)
    b2 = params["b2"].astype(jnp.float32)
    b3 = params["b3"].astype(jnp.float32)
    b4 = params["b4"].astype(jnp.float32)
    b5 = params["b5"].astype(jnp.float32)
    if n_pad != num_classes:                      # zero-pad final layer to 128 lanes
        w5 = jnp.pad(w5, ((0, 0), (0, n_pad - num_classes)))
        b5 = jnp.pad(b5, ((0, 0), (0, n_pad - num_classes)))

    def resident(arr):
        # Grid-invariant block (weights / biases): stays VMEM resident.
        return pl.BlockSpec(arr.shape, lambda i, nd=arr.ndim: (0,) * nd)

    in_specs = [
        pl.BlockSpec((tb, F), lambda i: (i, 0)),  # x batch tile
        resident(w1), resident(b1),
        resident(w2), resident(b2),
        resident(w3), resident(b3),
        resident(w4), resident(b4),
        resident(w5), resident(b5),
    ]
    out_spec = pl.BlockSpec((tb, n_pad), lambda i: (i, 0))

    # Advisory cost estimate so XLA schedules the custom call sensibly.
    layer_dims = [(F, 512), (512, 256), (256, 128), (128, 64), (64, n_pad)]
    flops = 2 * B_pad * sum(k * n for k, n in layer_dims)
    bytes_accessed = (
        B_pad * F * 2                                   # bf16 input
        + sum(k * n * 2 for k, n in layer_dims)         # bf16 weights
        + sum(n * 4 for _, n in layer_dims)             # f32 biases
        + B_pad * n_pad * 4                             # f32 output
    )

    out = pl.pallas_call(
        _mlp_kernel,
        out_shape=jax.ShapeDtypeStruct((B_pad, n_pad), jnp.float32),
        grid_spec=pltpu.PrefetchScalarGridSpec(
            num_scalar_prefetch=0,
            grid=grid,
            in_specs=in_specs,
            out_specs=out_spec,
        ),
        compiler_params=pltpu.CompilerParams(
            dimension_semantics=("parallel",)),
        cost_estimate=pl.CostEstimate(
            flops=flops, transcendentals=0, bytes_accessed=bytes_accessed),
    )(x_bf,
      w1, b1, w2, b2, w3, b3, w4, b4, w5, b5)

    return out[:B, :num_classes]


def init_params(key, input_size, num_classes):
    """Deterministic init mirroring nn.Linear defaults: U(-1/sqrt(in), 1/sqrt(in))."""
    dims = [(input_size, 512), (512, 256), (256, 128), (128, 64), (64, num_classes)]
    params = {}
    for idx, (fan_in, fan_out) in enumerate(dims, start=1):
        key, kw, kb = jax.random.split(key, 3)
        bound = 1.0 / (fan_in ** 0.5)
        params[f"w{idx}"] = jax.random.uniform(
            kw, (fan_in, fan_out), jnp.float32, -bound, bound)
        params[f"b{idx}"] = jax.random.uniform(
            kb, (1, fan_out), jnp.float32, -bound, bound)
    return params


def model_no_conv_dropout(x_nchw, params):
    """Full forward: Flatten (NCHW -> (B, C*H*W)) then the fused MLP kernel."""
    B = x_nchw.shape[0]
    x_flat = x_nchw.reshape(B, -1)
    return mlp_forward(x_flat, params)


def _reference(x_nchw, params):
    """Plain-JAX reference mirroring the kernel's bf16-matmul / f32-accumulate math."""
    def dot(a, w):
        return jnp.dot(a.astype(jnp.bfloat16), w.astype(jnp.bfloat16),
                       preferred_element_type=jnp.float32)
    h = x_nchw.reshape(x_nchw.shape[0], -1)
    h = jnp.maximum(dot(h, params["w1"]) + params["b1"], 0.0)
    h = jnp.maximum(dot(h, params["w2"]) + params["b2"], 0.0)
    h = jnp.maximum(dot(h, params["w3"]) + params["b3"], 0.0)
    h = dot(h, params["w4"]) + params["b4"]
    return dot(h, params["w5"]) + params["b5"]


if __name__ == "__main__":
    key = jax.random.PRNGKey(0)
    k_x, k_p = jax.random.split(key)

    # Small shapes consistent with the module: NCHW input, flattened size = C*H*W.
    B, C, H, W = 2, 4, 16, 16
    input_size = C * H * W          # 1024
    num_classes = 10

    x = jax.random.normal(k_x, (B, C, H, W), jnp.float32)
    params = init_params(k_p, input_size, num_classes)

    out = model_no_conv_dropout(x, params)
    out = jax.block_until_ready(out)

    ref = _reference(x, params)
    assert out.shape == (B, num_classes), out.shape
    assert jnp.allclose(out, ref, atol=2e-2, rtol=2e-2), (
        float(jnp.max(jnp.abs(out - ref))))

    print("KERNEL_OK")
</pallas_src>

<mosaic_0001>
module attributes {stable_mosaic.version = 11 : i64} {
  func.func @_mlp_kernel(%arg0: i32, %arg1: memref<16x1024xbf16, #tpu.memory_space<vmem>>, %arg2: memref<1024x512xbf16, #tpu.memory_space<vmem>>, %arg3: memref<1x512xf32, #tpu.memory_space<vmem>>, %arg4: memref<512x256xbf16, #tpu.memory_space<vmem>>, %arg5: memref<1x256xf32, #tpu.memory_space<vmem>>, %arg6: memref<256x128xbf16, #tpu.memory_space<vmem>>, %arg7: memref<1x128xf32, #tpu.memory_space<vmem>>, %arg8: memref<128x64xbf16, #tpu.memory_space<vmem>>, %arg9: memref<1x64xf32, #tpu.memory_space<vmem>>, %arg10: memref<64x128xbf16, #tpu.memory_space<vmem>>, %arg11: memref<1x128xf32, #tpu.memory_space<vmem>>, %arg12: memref<16x128xf32, #tpu.memory_space<vmem>>) attributes {dimension_semantics = [#tpu.dimension_semantics<parallel>], iteration_bounds = array<i64: 1>, scalar_prefetch = 0 : i64, scratch_operands = 0 : i64, tpu.core_type = #tpu.core_type<tc>, window_params = [{transform_indices = @transform_0, window_bounds = array<i64: 16, 1024>}, {pipeline_mode = #tpu.pipeline_mode<synchronous>, transform_indices = @transform_1, window_bounds = array<i64: 1024, 512>}, {pipeline_mode = #tpu.pipeline_mode<synchronous>, transform_indices = @transform_2, window_bounds = array<i64: 1, 512>}, {pipeline_mode = #tpu.pipeline_mode<synchronous>, transform_indices = @transform_3, window_bounds = array<i64: 512, 256>}, {pipeline_mode = #tpu.pipeline_mode<synchronous>, transform_indices = @transform_4, window_bounds = array<i64: 1, 256>}, {pipeline_mode = #tpu.pipeline_mode<synchronous>, transform_indices = @transform_5, window_bounds = array<i64: 256, 128>}, {pipeline_mode = #tpu.pipeline_mode<synchronous>, transform_indices = @transform_6, window_bounds = array<i64: 1, 128>}, {pipeline_mode = #tpu.pipeline_mode<synchronous>, transform_indices = @transform_7, window_bounds = array<i64: 128, 64>}, {pipeline_mode = #tpu.pipeline_mode<synchronous>, transform_indices = @transform_8, window_bounds = array<i64: 1, 64>}, {pipeline_mode = #tpu.pipeline_mode<synchronous>, transform_indices = @transform_9, window_bounds = array<i64: 64, 128>}, {pipeline_mode = #tpu.pipeline_mode<synchronous>, transform_indices = @transform_10, window_bounds = array<i64: 1, 128>}, {transform_indices = @transform_11, window_bounds = array<i64: 16, 128>}]} {
    %c0 = arith.constant 0 : index
    %c0_0 = arith.constant 0 : index
    %0 = vector.load %arg1[%c0, %c0_0] : memref<16x1024xbf16, #tpu.memory_space<vmem>>, vector<16x1024xbf16>
    %c0_1 = arith.constant 0 : index
    %c0_2 = arith.constant 0 : index
    %1 = vector.load %arg2[%c0_1, %c0_2] : memref<1024x512xbf16, #tpu.memory_space<vmem>>, vector<1024x512xbf16>
    %cst = arith.constant dense<0.000000e+00> : vector<16x512xf32>
    %2 = tpu.matmul %0, %1, %cst {dimension_numbers = #tpu.dot_dimension_numbers<[1], [0], [0], [1], [0, 0, 1, 1], [], []>} : vector<16x1024xbf16>, vector<1024x512xbf16>, vector<16x512xf32> -> vector<16x512xf32>
    %c0_3 = arith.constant 0 : index
    %c0_4 = arith.constant 0 : index
    %3 = vector.load %arg3[%c0_3, %c0_4] : memref<1x512xf32, #tpu.memory_space<vmem>>, vector<1x512xf32>
    %4 = vector.broadcast %3 : vector<1x512xf32> to vector<16x512xf32>
    %5 = arith.addf %2, %4 : vector<16x512xf32>
    %cst_5 = arith.constant 0.000000e+00 : f32
    %6 = vector.broadcast %cst_5 : f32 to vector<16x512xf32>
    %7 = arith.maximumf %5, %6 : vector<16x512xf32>
    %8 = arith.truncf %7 : vector<16x512xf32> to vector<16x512xbf16>
    %c0_6 = arith.constant 0 : index
    %c0_7 = arith.constant 0 : index
    %9 = vector.load %arg4[%c0_6, %c0_7] : memref<512x256xbf16, #tpu.memory_space<vmem>>, vector<512x256xbf16>
    %cst_8 = arith.constant dense<0.000000e+00> : vector<16x256xf32>
    %10 = tpu.matmul %8, %9, %cst_8 {dimension_numbers = #tpu.dot_dimension_numbers<[1], [0], [0], [1], [0, 0, 1, 1], [], []>} : vector<16x512xbf16>, vector<512x256xbf16>, vector<16x256xf32> -> vector<16x256xf32>
    %c0_9 = arith.constant 0 : index
    %c0_10 = arith.constant 0 : index
    %11 = vector.load %arg5[%c0_9, %c0_10] : memref<1x256xf32, #tpu.memory_space<vmem>>, vector<1x256xf32>
    %12 = vector.broadcast %11 : vector<1x256xf32> to vector<16x256xf32>
    %13 = arith.addf %10, %12 : vector<16x256xf32>
    %cst_11 = arith.constant 0.000000e+00 : f32
    %14 = vector.broadcast %cst_11 : f32 to vector<16x256xf32>
    %15 = arith.maximumf %13, %14 : vector<16x256xf32>
    %16 = arith.truncf %15 : vector<16x256xf32> to vector<16x256xbf16>
    %c0_12 = arith.constant 0 : index
    %c0_13 = arith.constant 0 : index
    %17 = vector.load %arg6[%c0_12, %c0_13] : memref<256x128xbf16, #tpu.memory_space<vmem>>, vector<256x128xbf16>
    %cst_14 = arith.constant dense<0.000000e+00> : vector<16x128xf32>
    %18 = tpu.matmul %16, %17, %cst_14 {dimension_numbers = #tpu.dot_dimension_numbers<[1], [0], [0], [1], [0, 0, 1, 1], [], []>} : vector<16x256xbf16>, vector<256x128xbf16>, vector<16x128xf32> -> vector<16x128xf32>
    %c0_15 = arith.constant 0 : index
    %c0_16 = arith.constant 0 : index
    %19 = vector.load %arg7[%c0_15, %c0_16] : memref<1x128xf32, #tpu.memory_space<vmem>>, vector<1x128xf32>
    %20 = vector.broadcast %19 : vector<1x128xf32> to vector<16x128xf32>
    %21 = arith.addf %18, %20 : vector<16x128xf32>
    %cst_17 = arith.constant 0.000000e+00 : f32
    %22 = vector.broadcast %cst_17 : f32 to vector<16x128xf32>
    %23 = arith.maximumf %21, %22 : vector<16x128xf32>
    %24 = arith.truncf %23 : vector<16x128xf32> to vector<16x128xbf16>
    %c0_18 = arith.constant 0 : index
    %c0_19 = arith.constant 0 : index
    %25 = vector.load %arg8[%c0_18, %c0_19] : memref<128x64xbf16, #tpu.memory_space<vmem>>, vector<128x64xbf16>
    %cst_20 = arith.constant dense<0.000000e+00> : vector<16x64xf32>
    %26 = tpu.matmul %24, %25, %cst_20 {dimension_numbers = #tpu.dot_dimension_numbers<[1], [0], [0], [1], [0, 0, 1, 1], [], []>} : vector<16x128xbf16>, vector<128x64xbf16>, vector<16x64xf32> -> vector<16x64xf32>
    %c0_21 = arith.constant 0 : index
    %c0_22 = arith.constant 0 : index
    %27 = vector.load %arg9[%c0_21, %c0_22] : memref<1x64xf32, #tpu.memory_space<vmem>>, vector<1x64xf32>
    %28 = vector.broadcast %27 : vector<1x64xf32> to vector<16x64xf32>
    %29 = arith.addf %26, %28 : vector<16x64xf32>
    %30 = arith.truncf %29 : vector<16x64xf32> to vector<16x64xbf16>
    %c0_23 = arith.constant 0 : index
    %c0_24 = arith.constant 0 : index
    %31 = vector.load %arg10[%c0_23, %c0_24] : memref<64x128xbf16, #tpu.memory_space<vmem>>, vector<64x128xbf16>
    %cst_25 = arith.constant dense<0.000000e+00> : vector<16x128xf32>
    %32 = tpu.matmul %30, %31, %cst_25 {dimension_numbers = #tpu.dot_dimension_numbers<[1], [0], [0], [1], [0, 0, 1, 1], [], []>} : vector<16x64xbf16>, vector<64x128xbf16>, vector<16x128xf32> -> vector<16x128xf32>
    %c0_26 = arith.constant 0 : index
    %c0_27 = arith.constant 0 : index
    %33 = vector.load %arg11[%c0_26, %c0_27] : memref<1x128xf32, #tpu.memory_space<vmem>>, vector<1x128xf32>
    %34 = vector.broadcast %33 : vector<1x128xf32> to vector<16x128xf32>
    %35 = arith.addf %32, %34 : vector<16x128xf32>
    %c0_28 = arith.constant 0 : index
    %c0_29 = arith.constant 0 : index
    %36 = vector.load %arg12[%c0_28, %c0_29] : memref<16x128xf32, #tpu.memory_space<vmem>>, vector<16x128xf32>
    tpu.vector_store %arg12[%c0_28, %c0_29], %35 {strides = array<i32>} : memref<16x128xf32, #tpu.memory_space<vmem>>, vector<16x128xf32>,
    return
  }
  func.func @transform_0(%arg0: i32) -> (i32, i32) {
    %c0_i32 = arith.constant 0 : i32
    %c0_i32_0 = arith.constant 0 : i32
    return %arg0, %c0_i32 : i32, i32
  }
  func.func @transform_1(%arg0: i32) -> (i32, i32) {
    %c0_i32 = arith.constant 0 : i32
    %c0_i32_0 = arith.constant 0 : i32
    %c0_i32_1 = arith.constant 0 : i32
    return %c0_i32, %c0_i32_0 : i32, i32
  }
  func.func @transform_2(%arg0: i32) -> (i32, i32) {
    %c0_i32 = arith.constant 0 : i32
    %c0_i32_0 = arith.constant 0 : i32
    %c0_i32_1 = arith.constant 0 : i32
    return %c0_i32, %c0_i32_0 : i32, i32
  }
  func.func @transform_3(%arg0: i32) -> (i32, i32) {
    %c0_i32 = arith.constant 0 : i32
    %c0_i32_0 = arith.constant 0 : i32
    %c0_i32_1 = arith.constant 0 : i32
    return %c0_i32, %c0_i32_0 : i32, i32
  }
  func.func @transform_4(%arg0: i32) -> (i32, i32) {
    %c0_i32 = arith.constant 0 : i32
    %c0_i32_0 = arith.constant 0 : i32
    %c0_i32_1 = arith.constant 0 : i32
    return %c0_i32, %c0_i32_0 : i32, i32
  }
  func.func @transform_5(%arg0: i32) -> (i32, i32) {
    %c0_i32 = arith.constant 0 : i32
    %c0_i32_0 = arith.constant 0 : i32
    %c0_i32_1 = arith.constant 0 : i32
    return %c0_i32, %c0_i32_0 : i32, i32
  }
  func.func @transform_6(%arg0: i32) -> (i32, i32) {
    %c0_i32 = arith.constant 0 : i32
    %c0_i32_0 = arith.constant 0 : i32
    %c0_i32_1 = arith.constant 0 : i32
    return %c0_i32, %c0_i32_0 : i32, i32
  }
  func.func @transform_7(%arg0: i32) -> (i32, i32) {
    %c0_i32 = arith.constant 0 : i32
    %c0_i32_0 = arith.constant 0 : i32
    %c0_i32_1 = arith.constant 0 : i32
    return %c0_i32, %c0_i32_0 : i32, i32
  }
  func.func @transform_8(%arg0: i32) -> (i32, i32) {
    %c0_i32 = arith.constant 0 : i32
    %c0_i32_0 = arith.constant 0 : i32
    %c0_i32_1 = arith.constant 0 : i32
    return %c0_i32, %c0_i32_0 : i32, i32
  }
  func.func @transform_9(%arg0: i32) -> (i32, i32) {
    %c0_i32 = arith.constant 0 : i32
    %c0_i32_0 = arith.constant 0 : i32
    %c0_i32_1 = arith.constant 0 : i32
    return %c0_i32, %c0_i32_0 : i32, i32
  }
  func.func @transform_10(%arg0: i32) -> (i32, i32) {
    %c0_i32 = arith.constant 0 : i32
    %c0_i32_0 = arith.constant 0 : i32
    %c0_i32_1 = arith.constant 0 : i32
    return %c0_i32, %c0_i32_0 : i32, i32
  }
  func.func @transform_11(%arg0: i32) -> (i32, i32) {
    %c0_i32 = arith.constant 0 : i32
    %c0_i32_0 = arith.constant 0 : i32
    return %arg0, %c0_i32 : i32, i32
  }
}

</mosaic_0001>

<bundles_post_ra>
// kernel: tpu_custom_call.1
= control target key start
LH: loop header
LB: loop body
LE: loop exit
PB: predicated region body
PF: predicated region fallthrough
CT: control target
= control target key end

     0   :  { %16 = vsyncpa [#allocation3], 0  ;;  %s5207_s0 = inlined_call_operand.vmem [shape: bf16[16,1024], index: 0, kind: input, shape index: {}]   ;;  %s5208_s1 = inlined_call_operand.hbm [shape: bf16[1024,512], index: 1, kind: input, shape index: {}]   ;;  %s5209_s2 = inlined_call_operand.hbm [shape: f32[1,512], index: 2, kind: input, shape index: {}]   ;;  %s5210_s3 = inlined_call_operand.hbm [shape: bf16[512,256], index: 3, kind: input, shape index: {}]   ;;  %s5211_s4 = inlined_call_operand.vmem [shape: f32[1,256], index: 4, kind: input, shape index: {}]   ;;  %s5212_s5 = inlined_call_operand.hbm [shape: bf16[256,128], index: 5, kind: input, shape index: {}]   ;;  %s5213_s6 = inlined_call_operand.vmem [shape: f32[1,128], index: 6, kind: input, shape index: {}]   ;;  %s5214_s7 = inlined_call_operand.vmem [shape: bf16[128,64], index: 7, kind: input, shape index: {}]   ;;  %s5215_s8 = inlined_call_operand.vmem [shape: f32[1,64], index: 8, kind: input, shape index: {}]   ;;  %s5216_s9 = inlined_call_operand.vmem [shape: bf16[64,128], index: 9, kind: input, shape index: {}]   ;;  %s5217_s10 = inlined_call_operand.vmem [shape: f32[1,128], index: 10, kind: input, shape index: {}]   ;;  %s5218_s11 = inlined_call_operand.hbm [shape: f32[16,128], index: 11, kind: output, shape index: {}]  }
   0x1   :  { %17 = vsyncpa [#allocation6], 0 }
   0x2   :  { %18 = vsyncpa [#allocation9], 0  ;;  %s40_s19 = sshll.u32 %s5209_s2, 4  ;;  %s41_s19 = int_to_ptr.hbm [resolvable:$true] %s40_s19 }
   0x3   :  { %19 = vsyncpa [#allocation4], 0  ;;  %s4909_s20 = smov [#allocation5]   ;;  %s26_s24 = sshll.u32 %s5208_s1, 4  ;;  %s27_s24 = int_to_ptr.hbm [resolvable:$true] %s26_s24 }
   0x4   :  { %s42_s21 = sshll.u32 %s4909_s20, 4  ;;  %s4910_s25 = smov [#allocation2]   ;;  %s43_s21 = int_to_ptr.vmem [resolvable:$true] %s42_s21 }
   0x5   :  { %45 = dma.hbm_to_vmem [thread:$0]  %s41_s19, 64, %s43_s21, [#allocation6]  }
   0x6   :  { %s28_s26 = sshll.u32 %s4910_s25, 4  ;;  %s4911_s27 = smov 256   ;;  %s29_s26 = int_to_ptr.vmem [resolvable:$true] %s28_s26 }
   0x7   :  { %s4912_s28 = smov 16   ;;  %s50_s2 = sshll.u32 %s5210_s3, 4  ;;  %s51_s2 = int_to_ptr.hbm [resolvable:$true] %s50_s2 }
   0x8   :  { %34 = dma.hbm_to_vmem [thread:$0]  %s27_s24, 32768, %s29_s26, [#allocation3], %s4911_s27, %s4911_s27, %s4912_s28  }
   0x9   :  { %s4913_s12 = smov [#allocation7]   ;;  %s65_s1 = sshll.u32 %s5212_s5, 4  ;;  %s66_s1 = int_to_ptr.hbm [resolvable:$true] %s65_s1 }
   0xa   :  { %s52_s13 = sshll.u32 %s4913_s12, 4  ;;  %s4914_s16 = smov 128   ;;  %s53_s13 = int_to_ptr.vmem [resolvable:$true] %s52_s13 }
   0xb   :  { %s4915_s17 = smov 8   ;;  %s4916_s18 = smov [#allocation8]  }
   0xc   :  { %58 = dma.hbm_to_vmem [thread:$0]  %s51_s2, 8192, %s53_s13, [#allocation6], %s4914_s16, %s4914_s16, %s4915_s17  }
   0xd   :  { %s67_s19 = sshll.u32 %s4916_s18, 4  ;;  %s4917_s20 = smov 64   ;;  %s68_s19 = int_to_ptr.vmem [resolvable:$true] %s67_s19 }
   0xe   :  { %s4918_s3 = smov 4  }
   0xf   :  { %73 = dma.hbm_to_vmem [thread:$0]  %s66_s1, 2048, %s68_s19, [#allocation9], %s4917_s20, %s4917_s20, %s4918_s3  }
  0x10   :  { %4901 = dma.done.wait [#allocation3], 32768  }
  0x11   :  { %4902 = vsyncadd [#allocation3], 4294934528 }
  0x12   :  { %4903 = dma.done.wait [#allocation6], 8256  }
  0x13   :  { %4904 = vsyncadd [#allocation6], 4294959040 }
  0x14   :  { %4905 = dma.done.wait [#allocation9], 2048  }
  0x15   :  { %4906 = vsyncadd [#allocation9], 4294965248  ;;  %v3132_v0 = vld [vmem:[#allocation2 + $0xe0] sm:$0xf]  ;;  %v4449_v1 = vld [vmem:[#allocation2 + $0xec] sm:$0xf0] }
  0x16   :  { %v3260_v2 = vld [vmem:[#allocation2 + $0x1e0] sm:$0xf]  ;;  %v3133_v3 = vor.u32 %v4449_v1, %v3132_v0  ;;  %v4481_v4 = vld [vmem:[#allocation2 + $0x1ec] sm:$0xf0]  ;;  %vm2945_vm0 = vcmask 523264   ;;  %s2971_s20 = sshll.u32 %s5218_s11, 4  ;;  %s2972_s20 = int_to_ptr.hbm [resolvable:$true] %s2971_s20 }
  0x17   :  { %v3388_v5 = vld [vmem:[#allocation2 + $0x2e0] sm:$0xf]  ;;  %v4513_v6 = vld [vmem:[#allocation2 + $0x2ec] sm:$0xf0]  ;;  %v3261_v7 = vor.u32 %v4481_v4, %v3260_v2 }
  0x18   :  { %v3389_v8 = vor.u32 %v4513_v6, %v3388_v5  ;;  %v3516_v9 = vld [vmem:[#allocation2 + $0x3e0] sm:$0xf]  ;;  %v4545_v10 = vld [vmem:[#allocation2 + $0x3ec] sm:$0xf0]  ;;  %1695 = vmatpush.bf16.msra.mxu0 %v3133_v3 }
  0x19   :  { %v3116_v11 = vld [vmem:[#allocation2 + $0xc0] sm:$0xf]  ;;  %v3517_v12 = vor.u32 %v4545_v10, %v3516_v9  ;;  %v4445_v13 = vld [vmem:[#allocation2 + $0xcc] sm:$0xf0]  ;;  %1709 = vmatpush.bf16.msra.mxu1 %v3261_v7 }
  0x1a   :  { %v3244_v14 = vld [vmem:[#allocation2 + $0x1c0] sm:$0xf]  ;;  %v4477_v15 = vld [vmem:[#allocation2 + $0x1cc] sm:$0xf0]  ;;  %1723 = vmatpush.bf16.msra.mxu2 %v3389_v8  ;;  %v3117_v16 = vor.u32 %v4445_v13, %v3116_v11 }
  0x1b   :  { %v3245_v17 = vor.u32 %v4477_v15, %v3244_v14  ;;  %v3372_v18 = vld [vmem:[#allocation2 + $0x2c0] sm:$0xf]  ;;  %v4509_v19 = vld [vmem:[#allocation2 + $0x2cc] sm:$0xf0]  ;;  %1737 = vmatpush.bf16.msra.mxu3 %v3517_v12 }
  0x1c   :  { %v3500_v20 = vld [vmem:[#allocation2 + $0x3c0] sm:$0xf]  ;;  %v3373_v21 = vor.u32 %v4509_v19, %v3372_v18  ;;  %v4541_v22 = vld [vmem:[#allocation2 + $0x3cc] sm:$0xf0]  ;;  %1696 = vmatpush.bf16.msra.mxu0 %v3117_v16 }
  0x1d   :  { %v3100_v23 = vld [vmem:[#allocation2 + $0xa0] sm:$0xf]  ;;  %v4441_v24 = vld [vmem:[#allocation2 + $0xac] sm:$0xf0]  ;;  %v3501_v25 = vor.u32 %v4541_v22, %v3500_v20  ;;  %1710 = vmatpush.bf16.msra.mxu1 %v3245_v17 }
  0x1e   :  { %v3228_v26 = vld [vmem:[#allocation2 + $0x1a0] sm:$0xf]  ;;  %v4473_v27 = vld [vmem:[#allocation2 + $0x1ac] sm:$0xf0]  ;;  %v3101_v29 = vor.u32 %v4441_v24, %v3100_v23  ;;  %1724 = vmatpush.bf16.msra.mxu2 %v3373_v21 }
  0x1f   :  { %v3356_v28 = vld [vmem:[#allocation2 + $0x2a0] sm:$0xf]  ;;  %v4505_v30 = vld [vmem:[#allocation2 + $0x2ac] sm:$0xf0]  ;;  %v3229_v33 = vor.u32 %v4473_v27, %v3228_v26  ;;  %1738 = vmatpush.bf16.msra.mxu3 %v3501_v25 }
  0x20   :  { %v3484_v31 = vld [vmem:[#allocation2 + $0x3a0] sm:$0xf]  ;;  %v4537_v32 = vld [vmem:[#allocation2 + $0x3ac] sm:$0xf0]  ;;  %v3357_v34 = vor.u32 %v4505_v30, %v3356_v28  ;;  %1697 = vmatpush.bf16.msra.mxu0 %v3101_v29 }
  0x21   :  { %v3084_v35 = vld [vmem:[#allocation2 + $0x80] sm:$0xf]  ;;  %v4437_v36 = vld [vmem:[#allocation2 + $0x8c] sm:$0xf0]  ;;  %v3485_v38 = vor.u32 %v4537_v32, %v3484_v31  ;;  %1711 = vmatpush.bf16.msra.mxu1 %v3229_v33 }
  0x22   :  { %v3212_v37 = vld [vmem:[#allocation2 + $0x180] sm:$0xf]  ;;  %v4469_v39 = vld [vmem:[#allocation2 + $0x18c] sm:$0xf0]  ;;  %v3085_v44 = vor.u32 %v4437_v36, %v3084_v35  ;;  %1725 = vmatpush.bf16.msra.mxu2 %v3357_v34 }
  0x23   :  { %v3340_v40 = vld [vmem:[#allocation2 + $0x280] sm:$0xf]  ;;  %v4501_v41 = vld [vmem:[#allocation2 + $0x28c] sm:$0xf0]  ;;  %v3213_v45 = vor.u32 %v4469_v39, %v3212_v37  ;;  %1739 = vmatpush.bf16.msra.mxu3 %v3485_v38 }
  0x24   :  { %v3468_v42 = vld [vmem:[#allocation2 + $0x380] sm:$0xf]  ;;  %v4533_v43 = vld [vmem:[#allocation2 + $0x38c] sm:$0xf0]  ;;  %v3341_v46 = vor.u32 %v4501_v41, %v3340_v40  ;;  %1698 = vmatpush.bf16.msra.mxu0 %v3085_v44 }
  0x25   :  { %v3068_v47 = vld [vmem:[#allocation2 + $0x60] sm:$0xf]  ;;  %v4433_v48 = vld [vmem:[#allocation2 + $0x6c] sm:$0xf0]  ;;  %v3469_v50 = vor.u32 %v4533_v43, %v3468_v42  ;;  %1712 = vmatpush.bf16.msra.mxu1 %v3213_v45 }
  0x26   :  { %v3196_v49 = vld [vmem:[#allocation2 + $0x160] sm:$0xf]  ;;  %v4465_v51 = vld [vmem:[#allocation2 + $0x16c] sm:$0xf0]  ;;  %v3069_v56 = vor.u32 %v4433_v48, %v3068_v47  ;;  %1726 = vmatpush.bf16.msra.mxu2 %v3341_v46 }
  0x27   :  { %v3324_v52 = vld [vmem:[#allocation2 + $0x260] sm:$0xf]  ;;  %v4497_v53 = vld [vmem:[#allocation2 + $0x26c] sm:$0xf0]  ;;  %v3197_v57 = vor.u32 %v4465_v51, %v3196_v49  ;;  %1740 = vmatpush.bf16.msra.mxu3 %v3469_v50 }
  0x28   :  { %v3452_v54 = vld [vmem:[#allocation2 + $0x360] sm:$0xf]  ;;  %v4529_v55 = vld [vmem:[#allocation2 + $0x36c] sm:$0xf0]  ;;  %v3325_v58 = vor.u32 %v4497_v53, %v3324_v52  ;;  %1699 = vmatpush.bf16.msra.mxu0 %v3069_v56 }
  0x29   :  { %v3052_v59 = vld [vmem:[#allocation2 + $0x40] sm:$0xf]  ;;  %v4429_v60 = vld [vmem:[#allocation2 + $0x4c] sm:$0xf0]  ;;  %v3453_v62 = vor.u32 %v4529_v55, %v3452_v54  ;;  %1713 = vmatpush.bf16.msra.mxu1 %v3197_v57  ;;  %v2996_v54 = vld [vmem:[%s5207_s0 + $0x8] sm:$0xf] }
  0x2a   :  { %v3180_v61 = vld [vmem:[#allocation2 + $0x140] sm:$0xf]  ;;  %v4461_v63 = vld [vmem:[#allocation2 + $0x14c] sm:$0xf0]  ;;  %v3053_v4 = vor.u32 %v4429_v60, %v3052_v59  ;;  %1727 = vmatpush.bf16.msra.mxu2 %v3325_v58  ;;  %v4416_v59 = vld [vmem:[%s5207_s0 + $0x24] sm:$0xf0] }
  0x2b   :  { %v3308_v0 = vld [vmem:[#allocation2 + $0x240] sm:$0xf]  ;;  %v4493_v1 = vld [vmem:[#allocation2 + $0x24c] sm:$0xf0]  ;;  %v3181_v5 = vor.u32 %v4461_v63, %v3180_v61  ;;  %1741 = vmatpush.bf16.msra.mxu3 %v3453_v62 }
  0x2c   :  { %v3436_v2 = vld [vmem:[#allocation2 + $0x340] sm:$0xf]  ;;  %v4525_v3 = vld [vmem:[#allocation2 + $0x34c] sm:$0xf0]  ;;  %v3309_v6 = vor.u32 %v4493_v1, %v3308_v0  ;;  %1700 = vmatpush.bf16.msra.mxu0 %v3053_v4  ;;  %v5009_v1 = vor.u32 %v4416_v59, %v2996_v54 }
  0x2d   :  { %v3036_v7 = vld [vmem:[#allocation2 + $0x20] sm:$0xf]  ;;  %v4425_v8 = vld [vmem:[#allocation2 + $0x2c] sm:$0xf0]  ;;  %v3437_v10 = vor.u32 %v4525_v3, %v3436_v2  ;;  %1714 = vmatpush.bf16.msra.mxu1 %v3181_v5 }
  0x2e   :  { %v3164_v9 = vld [vmem:[#allocation2 + $0x120] sm:$0xf]  ;;  %v4457_v11 = vld [vmem:[#allocation2 + $0x12c] sm:$0xf0]  ;;  %v3037_v16 = vor.u32 %v4425_v8, %v3036_v7  ;;  %1728 = vmatpush.bf16.msra.mxu2 %v3309_v6  ;;  %v4411_v6 = vld [vmem:[%s5207_s0 + $0x4] sm:$0xf] }
  0x2f   :  { %v3292_v12 = vld [vmem:[#allocation2 + $0x220] sm:$0xf]  ;;  %v4489_v13 = vld [vmem:[#allocation2 + $0x22c] sm:$0xf0]  ;;  %v3165_v19 = vor.u32 %v4457_v11, %v3164_v9  ;;  %1742 = vmatpush.bf16.msra.mxu3 %v3437_v10  ;;  %v2990_v7 = vld [vmem:[%s5207_s0 + $0x20] sm:$0xf0] }
  0x30   :  { %v3420_v14 = vld [vmem:[#allocation2 + $0x320] sm:$0xf]  ;;  %v4521_v15 = vld [vmem:[#allocation2 + $0x32c] sm:$0xf0]  ;;  %v3293_v20 = vor.u32 %v4489_v13, %v3292_v12  ;;  %1701 = vmatpush.bf16.msra.mxu0 %v3037_v16  ;;  %v4412_v8 = vld [vmem:[%s5207_s0 + $0xc] sm:$0xf]  ;;  %v5022_v10 = vor.u32 %v4411_v6, %v2990_v7 }
  0x31   :  { %v3020_v17 = vld [vmem:[#allocation2] sm:$0xf]  ;;  %v4421_v18 = vld [vmem:[#allocation2 + $0xc] sm:$0xf0]  ;;  %v3421_v24 = vor.u32 %v4521_v15, %v3420_v14  ;;  %1715 = vmatpush.bf16.msra.mxu1 %v3165_v19  ;;  %v2998_v11 = vld [vmem:[%s5207_s0 + $0x28] sm:$0xf0] }
  0x32   :  { %v3148_v21 = vld [vmem:[#allocation2 + $0x100] sm:$0xf]  ;;  %v4453_v22 = vld [vmem:[#allocation2 + $0x10c] sm:$0xf0]  ;;  %v3021_v31 = vor.u32 %v4421_v18, %v3020_v17  ;;  %1729 = vmatpush.bf16.msra.mxu2 %v3293_v20  ;;  %v5027_v17 = vor.u32 %v4412_v8, %v2998_v11 }
  0x33   :  { %v3276_v23 = vld [vmem:[#allocation2 + $0x200] sm:$0xf]  ;;  %v4485_v25 = vld [vmem:[#allocation2 + $0x20c] sm:$0xf0]  ;;  %v3149_v35 = vor.u32 %v4453_v22, %v3148_v21  ;;  %1743 = vmatpush.bf16.msra.mxu3 %v3421_v24 }
  0x34   :  { %v3404_v26 = vld [vmem:[#allocation2 + $0x300] sm:$0xf]  ;;  %v4517_v27 = vld [vmem:[#allocation2 + $0x30c] sm:$0xf0]  ;;  %v3277_v36 = vor.u32 %v4485_v25, %v3276_v23  ;;  %1702 = vmatpush.bf16.msra.mxu0 %v3021_v31 }
  0x35   :  { %v3644_v28 = vld [vmem:[#allocation2 + $0x4e0] sm:$0xf]  ;;  %v4577_v29 = vld [vmem:[#allocation2 + $0x4ec] sm:$0xf0]  ;;  %v3405_v39 = vor.u32 %v4517_v27, %v3404_v26  ;;  %1716 = vmatpush.bf16.msra.mxu1 %v3149_v35 }
  0x36   :  { %v3772_v30 = vld [vmem:[#allocation2 + $0x5e0] sm:$0xf]  ;;  %v4609_v32 = vld [vmem:[#allocation2 + $0x5ec] sm:$0xf0]  ;;  %v3645_v40 = vor.u32 %v4577_v29, %v3644_v28  ;;  %1730 = vmatpush.bf16.msra.mxu2 %v3277_v36 }
  0x37   :  { %v3900_v33 = vld [vmem:[#allocation2 + $0x6e0] sm:$0xf]  ;;  %v4641_v34 = vld [vmem:[#allocation2 + $0x6ec] sm:$0xf0]  ;;  %v3773_v43 = vor.u32 %v4609_v32, %v3772_v30  ;;  %1744 = vmatpush.bf16.msra.mxu3 %v3405_v39 }
  0x38   :  { %v4028_v37 = vld [vmem:[#allocation2 + $0x7e0] sm:$0xf]  ;;  %v4673_v38 = vld [vmem:[#allocation2 + $0x7ec] sm:$0xf0]  ;;  %v3901_v44 = vor.u32 %v4641_v34, %v3900_v33  ;;  %1751 = vmatpush.bf16.msrb.mxu0 %v3645_v40  ;;  %1717 = vmatmul.bf16.vlgmr.msra.gmra.mxu1 %v5022_v10 }
  0x39   :  { %v3628_v41 = vld [vmem:[#allocation2 + $0x4c0] sm:$0xf]  ;;  %v4573_v42 = vld [vmem:[#allocation2 + $0x4cc] sm:$0xf0]  ;;  %v4029_v48 = vor.u32 %v4673_v38, %v4028_v37  ;;  %1765 = vmatpush.bf16.msrb.mxu1 %v3773_v43  ;;  %1731 = vmatmul.bf16.vlgmr.msra.gmra.mxu2 %v5009_v1 }
  0x3a   :  { %v3756_v45 = vld [vmem:[#allocation2 + $0x5c0] sm:$0xf]  ;;  %v4605_v46 = vld [vmem:[#allocation2 + $0x5cc] sm:$0xf0]  ;;  %v3629_v55 = vor.u32 %v4573_v42, %v3628_v41  ;;  %1779 = vmatpush.bf16.msrb.mxu2 %v3901_v44  ;;  %1745 = vmatmul.bf16.vlgmr.msra.gmra.mxu3 %v5027_v17 }
  0x3b   :  { %v3884_v47 = vld [vmem:[#allocation2 + $0x6c0] sm:$0xf]  ;;  %v4637_v49 = vld [vmem:[#allocation2 + $0x6cc] sm:$0xf0]  ;;  %v3757_v60 = vor.u32 %v4605_v46, %v3756_v45  ;;  %1793 = vmatpush.bf16.msrb.mxu3 %v4029_v48 }
  0x3c   :  { %v4012_v50 = vld [vmem:[#allocation2 + $0x7c0] sm:$0xf]  ;;  %v4669_v51 = vld [vmem:[#allocation2 + $0x7cc] sm:$0xf0]  ;;  %v3885_v61 = vor.u32 %v4637_v49, %v3884_v47  ;;  %1752 = vmatpush.bf16.msrb.mxu0 %v3629_v55 }
  0x3d   :  { %v2988_v52 = vld [vmem:[%s5207_s0] sm:$0xf]  ;;  %v4569_v57 = vld [vmem:[#allocation2 + $0x4ac] sm:$0xf0]  ;;  %v4013_v2 = vor.u32 %v4669_v51, %v4012_v50  ;;  %1766 = vmatpush.bf16.msrb.mxu1 %v3757_v60 }
  0x3e   :  { %v4415_v53 = vld [vmem:[%s5207_s0 + $0x1c] sm:$0xf0]  ;;  %v4601_v63 = vld [vmem:[#allocation2 + $0x5ac] sm:$0xf0]  ;;  %1780 = vmatpush.bf16.msrb.mxu2 %v3885_v61 }
  0x3f   :  { %v3612_v56 = vld [vmem:[#allocation2 + $0x4a0] sm:$0xf]  ;;  %v5004_v58 = vor.u32 %v4415_v53, %v2988_v52  ;;  %v4633_v3 = vld [vmem:[#allocation2 + $0x6ac] sm:$0xf0]  ;;  %1794 = vmatpush.bf16.msrb.mxu3 %v4013_v2 }
  0x40   :  { %v3740_v62 = vld [vmem:[#allocation2 + $0x5a0] sm:$0xf]  ;;  %v4665_v5 = vld [vmem:[#allocation2 + $0x7ac] sm:$0xf0]  ;;  %v3613_v9 = vor.u32 %v4569_v57, %v3612_v56 }
  0x41   :  { %v3868_v0 = vld [vmem:[#allocation2 + $0x6a0] sm:$0xf]  ;;  %1703 = vmatmul.bf16.vlgmr.msra.gmra.mxu0 %v5004_v58  ;;  %v3741_v12 = vor.u32 %v4601_v63, %v3740_v62  ;;  %v4565_v15 = vld [vmem:[#allocation2 + $0x48c] sm:$0xf0] }
  0x42   :  { %v3996_v4 = vld [vmem:[#allocation2 + $0x7a0] sm:$0xf]  ;;  %v3869_v13 = vor.u32 %v4633_v3, %v3868_v0  ;;  %v4597_v19 = vld [vmem:[#allocation2 + $0x58c] sm:$0xf0]  ;;  %1753 = vmatpush.bf16.msrb.mxu0 %v3613_v9  ;;  %v4447_v9 = vld [vmem:[#allocation2 + $0xe4] sm:$0xf] }
  0x43   :  { %v3596_v14 = vld [vmem:[#allocation2 + $0x480] sm:$0xf]  ;;  %v3997_v18 = vor.u32 %v4665_v5, %v3996_v4  ;;  %v4629_v21 = vld [vmem:[#allocation2 + $0x68c] sm:$0xf0]  ;;  %1767 = vmatpush.bf16.msrb.mxu1 %v3741_v12  ;;  %v3134_v12 = vld [vmem:[#allocation2 + $0xf0] sm:$0xf0] }
  0x44   :  { %v3724_v16 = vld [vmem:[#allocation2 + $0x580] sm:$0xf]  ;;  %v4661_v23 = vld [vmem:[#allocation2 + $0x78c] sm:$0xf0]  ;;  %v3597_v24 = vor.u32 %v4565_v15, %v3596_v14  ;;  %1781 = vmatpush.bf16.msrb.mxu2 %v3869_v13  ;;  %v4479_v13 = vld [vmem:[#allocation2 + $0x1e4] sm:$0xf] }
  0x45   :  { %v3852_v20 = vld [vmem:[#allocation2 + $0x680] sm:$0xf]  ;;  %v3725_v25 = vor.u32 %v4597_v19, %v3724_v16  ;;  %v4561_v28 = vld [vmem:[#allocation2 + $0x46c] sm:$0xf0]  ;;  %1795 = vmatpush.bf16.msrb.mxu3 %v3997_v18  ;;  %v3262_v14 = vld [vmem:[#allocation2 + $0x1f0] sm:$0xf0] }
  0x46   :  { %v3980_v22 = vld [vmem:[#allocation2 + $0x780] sm:$0xf]  ;;  %v3853_v26 = vor.u32 %v4629_v21, %v3852_v20  ;;  %v4593_v31 = vld [vmem:[#allocation2 + $0x56c] sm:$0xf0]  ;;  %1754 = vmatpush.bf16.msrb.mxu0 %v3597_v24  ;;  %v4511_v15 = vld [vmem:[#allocation2 + $0x2e4] sm:$0xf] }
  0x47   :  { %v3580_v27 = vld [vmem:[#allocation2 + $0x460] sm:$0xf]  ;;  %v3981_v30 = vor.u32 %v4661_v23, %v3980_v22  ;;  %v4625_v33 = vld [vmem:[#allocation2 + $0x66c] sm:$0xf0]  ;;  %1768 = vmatpush.bf16.msrb.mxu1 %v3725_v25  ;;  %v3390_v16 = vld [vmem:[#allocation2 + $0x2f0] sm:$0xf0] }
  0x48   :  { %v3708_v29 = vld [vmem:[#allocation2 + $0x560] sm:$0xf]  ;;  %v4657_v35 = vld [vmem:[#allocation2 + $0x76c] sm:$0xf0]  ;;  %v3581_v36 = vor.u32 %v4561_v28, %v3580_v27  ;;  %1782 = vmatpush.bf16.msrb.mxu2 %v3853_v26  ;;  %v4543_v18 = vld [vmem:[#allocation2 + $0x3e4] sm:$0xf] }
  0x49   :  { %v3836_v32 = vld [vmem:[#allocation2 + $0x660] sm:$0xf]  ;;  %v3709_v37 = vor.u32 %v4593_v31, %v3708_v29  ;;  %v4557_v40 = vld [vmem:[#allocation2 + $0x44c] sm:$0xf0]  ;;  %1796 = vmatpush.bf16.msrb.mxu3 %v3981_v30  ;;  %v3518_v20 = vld [vmem:[#allocation2 + $0x3f0] sm:$0xf0]  ;;  %v3137_v29 = vor.u32 %v4447_v9, %v3134_v12 }
  0x4a   :  { %v3964_v34 = vld [vmem:[#allocation2 + $0x760] sm:$0xf]  ;;  %v3837_v38 = vor.u32 %v4625_v33, %v3836_v32  ;;  %v4589_v43 = vld [vmem:[#allocation2 + $0x54c] sm:$0xf0]  ;;  %1755 = vmatpush.bf16.msrb.mxu0 %v3581_v36  ;;  %v3012_v25 = vld [vmem:[%s5207_s0 + $0x18] sm:$0xf]  ;;  %v3265_v33 = vor.u32 %v4479_v13, %v3262_v14 }
  0x4b   :  { %v3564_v39 = vld [vmem:[#allocation2 + $0x440] sm:$0xf]  ;;  %v3965_v42 = vor.u32 %v4657_v35, %v3964_v34  ;;  %v4621_v45 = vld [vmem:[#allocation2 + $0x64c] sm:$0xf0]  ;;  %1769 = vmatpush.bf16.msrb.mxu1 %v3709_v37  ;;  %v4418_v26 = vld [vmem:[%s5207_s0 + $0x34] sm:$0xf0]  ;;  %v3393_v34 = vor.u32 %v4511_v15, %v3390_v16 }
  0x4c   :  { %v3692_v41 = vld [vmem:[#allocation2 + $0x540] sm:$0xf]  ;;  %v4653_v47 = vld [vmem:[#allocation2 + $0x74c] sm:$0xf0]  ;;  %v3565_v48 = vor.u32 %v4557_v40, %v3564_v39  ;;  %1783 = vmatpush.bf16.msrb.mxu2 %v3837_v38  ;;  %v4413_v27 = vld [vmem:[%s5207_s0 + $0x14] sm:$0xf]  ;;  %v3521_v38 = vor.u32 %v4543_v18, %v3518_v20 }
  0x4d   :  { %v3820_v44 = vld [vmem:[#allocation2 + $0x640] sm:$0xf]  ;;  %v3693_v50 = vor.u32 %v4589_v43, %v3692_v41  ;;  %v4553_v52 = vld [vmem:[#allocation2 + $0x42c] sm:$0xf0]  ;;  %1797 = vmatpush.bf16.msrb.mxu3 %v3965_v42  ;;  %v3006_v30 = vld [vmem:[%s5207_s0 + $0x30] sm:$0xf0]  ;;  %v5057_v43 = vor.u32 %v4418_v26, %v3012_v25 }
  0x4e   :  { %v3948_v46 = vld [vmem:[#allocation2 + $0x740] sm:$0xf]  ;;  %v3821_v51 = vor.u32 %v4621_v45, %v3820_v44  ;;  %v4585_v54 = vld [vmem:[#allocation2 + $0x52c] sm:$0xf0]  ;;  %1756 = vmatpush.bf16.msrb.mxu0 %v3565_v48  ;;  %v4414_v31 = vld [vmem:[%s5207_s0 + $0x1c] sm:$0xf]  ;;  %v5059_v44 = vor.u32 %v4413_v27, %v3006_v30 }
  0x4f   :  { %v3548_v49 = vld [vmem:[#allocation2 + $0x420] sm:$0xf]  ;;  %v3949_v55 = vor.u32 %v4653_v47, %v3948_v46  ;;  %v4617_v57 = vld [vmem:[#allocation2 + $0x62c] sm:$0xf0]  ;;  %1770 = vmatpush.bf16.msrb.mxu1 %v3693_v50  ;;  %v3014_v32 = vld [vmem:[%s5207_s0 + $0x38] sm:$0xf0] }
  0x50   :  { %v3676_v53 = vld [vmem:[#allocation2 + $0x520] sm:$0xf]  ;;  %v4649_v60 = vld [vmem:[#allocation2 + $0x72c] sm:$0xf0]  ;;  %v3549_v63 = vor.u32 %v4553_v52, %v3548_v49  ;;  %1784 = vmatpush.bf16.msrb.mxu2 %v3821_v51  ;;  %v4443_v35 = vld [vmem:[#allocation2 + $0xc4] sm:$0xf]  ;;  %v5061_v47 = vor.u32 %v4414_v31, %v3014_v32 }
  0x51   :  { %v3804_v56 = vld [vmem:[#allocation2 + $0x620] sm:$0xf]  ;;  %v4549_v62 = vld [vmem:[#allocation2 + $0x40c] sm:$0xf0]  ;;  %v3677_v5 = vor.u32 %v4585_v54, %v3676_v53  ;;  %1798 = vmatpush.bf16.msrb.mxu3 %v3949_v55  ;;  %v3118_v36 = vld [vmem:[#allocation2 + $0xd0] sm:$0xf0] }
  0x52   :  { %v3932_v59 = vld [vmem:[#allocation2 + $0x720] sm:$0xf]  ;;  %v4581_v2 = vld [vmem:[#allocation2 + $0x50c] sm:$0xf0]  ;;  %v3805_v6 = vor.u32 %v4617_v57, %v3804_v56  ;;  %1757 = vmatpush.bf16.msrb.mxu0 %v3549_v63  ;;  %v4475_v37 = vld [vmem:[#allocation2 + $0x1c4] sm:$0xf]  ;;  %v3121_v48 = vor.u32 %v4443_v35, %v3118_v36 }
  0x53   :  { %v3532_v61 = vld [vmem:[#allocation2 + $0x400] sm:$0xf]  ;;  %v4613_v4 = vld [vmem:[#allocation2 + $0x60c] sm:$0xf0]  ;;  %v3933_v11 = vor.u32 %v4649_v60, %v3932_v59  ;;  %1771 = vmatpush.bf16.msrb.mxu1 %v3677_v5  ;;  %v3246_v40 = vld [vmem:[#allocation2 + $0x1d0] sm:$0xf0] }
  0x54   :  { %v3660_v0 = vld [vmem:[#allocation2 + $0x500] sm:$0xf]  ;;  %v4645_v8 = vld [vmem:[#allocation2 + $0x70c] sm:$0xf0]  ;;  %v3533_v19 = vor.u32 %v4549_v62, %v3532_v61  ;;  %1785 = vmatpush.bf16.msrb.mxu2 %v3805_v6  ;;  %v4507_v41 = vld [vmem:[#allocation2 + $0x2c4] sm:$0xf]  ;;  %v3249_v49 = vor.u32 %v4475_v37, %v3246_v40 }
  0x55   :  { %v3788_v3 = vld [vmem:[#allocation2 + $0x600] sm:$0xf]  ;;  %v3004_v21 = vld [vmem:[%s5207_s0 + $0x10] sm:$0xf]  ;;  %v3661_v23 = vor.u32 %v4581_v2, %v3660_v0  ;;  %1799 = vmatpush.bf16.msrb.mxu3 %v3933_v11  ;;  %v3374_v42 = vld [vmem:[#allocation2 + $0x2d0] sm:$0xf0] }
  0x56   :  { %v3916_v7 = vld [vmem:[#allocation2 + $0x700] sm:$0xf]  ;;  %v4417_v22 = vld [vmem:[%s5207_s0 + $0x2c] sm:$0xf0]  ;;  %v3789_v24 = vor.u32 %v4613_v4, %v3788_v3  ;;  %1758 = vmatpush.bf16.msrb.mxu0 %v3533_v19  ;;  %v4539_v45 = vld [vmem:[#allocation2 + $0x3c4] sm:$0xf]  ;;  %v3377_v50 = vor.u32 %v4507_v41, %v3374_v42 }
  0x57   :  { %v3917_v28 = vor.u32 %v4645_v8, %v3916_v7  ;;  %v5055_v39 = vor.u32 %v4417_v22, %v3004_v21  ;;  %1772 = vmatpush.bf16.msrb.mxu1 %v3661_v23  ;;  %v3502_v46 = vld [vmem:[#allocation2 + $0x3d0] sm:$0xf0]  ;;  %v4439_v51 = vld [vmem:[#allocation2 + $0xa4] sm:$0xf] }
  0x58   :  { %1786 = vmatpush.bf16.msrb.mxu2 %v3789_v24  ;;  %v3102_v52 = vld [vmem:[#allocation2 + $0xb0] sm:$0xf0]  ;;  %v4471_v53 = vld [vmem:[#allocation2 + $0x1a4] sm:$0xf]  ;;  %v3505_v54 = vor.u32 %v4539_v45, %v3502_v46 }
  0x59   :  { %1800 = vmatpush.bf16.msrb.mxu3 %v3917_v28  ;;  %1759 = vmatmul.bf16.vlgmr.msrb.gmra.mxu0 %v5055_v39  ;;  %v3230_v55 = vld [vmem:[#allocation2 + $0x1b0] sm:$0xf0]  ;;  %v4503_v56 = vld [vmem:[#allocation2 + $0x2a4] sm:$0xf]  ;;  %v3105_v61 = vor.u32 %v4439_v51, %v3102_v52 }
  0x5a   :  { %1807 = vmatpush.bf16.msra.mxu0 %v3137_v29  ;;  %v3358_v57 = vld [vmem:[#allocation2 + $0x2b0] sm:$0xf0]  ;;  %1773 = vmatmul.bf16.vlgmr.msrb.gmra.mxu1 %v5059_v44  ;;  %v4535_v59 = vld [vmem:[#allocation2 + $0x3a4] sm:$0xf]  ;;  %v3233_v62 = vor.u32 %v4471_v53, %v3230_v55 }
  0x5b   :  { %1821 = vmatpush.bf16.msra.mxu1 %v3265_v33  ;;  %1787 = vmatmul.bf16.vlgmr.msrb.gmra.mxu2 %v5057_v43  ;;  %v3486_v60 = vld [vmem:[#allocation2 + $0x3b0] sm:$0xf0]  ;;  %v3361_v63 = vor.u32 %v4503_v56, %v3358_v57  ;;  %v4435_v0 = vld [vmem:[#allocation2 + $0x84] sm:$0xf] }
  0x5c   :  { %1835 = vmatpush.bf16.msra.mxu2 %v3393_v34  ;;  %1801 = vmatmul.bf16.vlgmr.msrb.gmra.mxu3 %v5061_v47  ;;  %v3086_v2 = vld [vmem:[#allocation2 + $0x90] sm:$0xf0]  ;;  %v4467_v3 = vld [vmem:[#allocation2 + $0x184] sm:$0xf]  ;;  %v3489_v4 = vor.u32 %v4535_v59, %v3486_v60 }
  0x5d   :  { %1849 = vmatpush.bf16.msra.mxu3 %v3521_v38  ;;  %v3214_v5 = vld [vmem:[#allocation2 + $0x190] sm:$0xf0]  ;;  %v4499_v6 = vld [vmem:[#allocation2 + $0x284] sm:$0xf]  ;;  %v3089_v11 = vor.u32 %v4435_v0, %v3086_v2 }
  0x5e   :  { %1808 = vmatpush.bf16.msra.mxu0 %v3121_v48  ;;  %v3342_v7 = vld [vmem:[#allocation2 + $0x290] sm:$0xf0]  ;;  %v4531_v8 = vld [vmem:[#allocation2 + $0x384] sm:$0xf]  ;;  %v3217_v12 = vor.u32 %v4467_v3, %v3214_v5 }
  0x5f   :  { %1822 = vmatpush.bf16.msra.mxu1 %v3249_v49  ;;  %v3470_v9 = vld [vmem:[#allocation2 + $0x390] sm:$0xf0]  ;;  %v3345_v13 = vor.u32 %v4499_v6, %v3342_v7  ;;  %v4431_v14 = vld [vmem:[#allocation2 + $0x64] sm:$0xf] }
  0x60   :  { %1836 = vmatpush.bf16.msra.mxu2 %v3377_v50  ;;  %v3070_v15 = vld [vmem:[#allocation2 + $0x70] sm:$0xf0]  ;;  %v4463_v16 = vld [vmem:[#allocation2 + $0x164] sm:$0xf]  ;;  %v3473_v18 = vor.u32 %v4531_v8, %v3470_v9 }
  0x61   :  { %1850 = vmatpush.bf16.msra.mxu3 %v3505_v54  ;;  %v3198_v19 = vld [vmem:[#allocation2 + $0x170] sm:$0xf0]  ;;  %v4495_v20 = vld [vmem:[#allocation2 + $0x264] sm:$0xf]  ;;  %v3073_v24 = vor.u32 %v4431_v14, %v3070_v15 }
  0x62   :  { %1809 = vmatpush.bf16.msra.mxu0 %v3105_v61  ;;  %v3326_v21 = vld [vmem:[#allocation2 + $0x270] sm:$0xf0]  ;;  %v4527_v22 = vld [vmem:[#allocation2 + $0x364] sm:$0xf]  ;;  %v3201_v25 = vor.u32 %v4463_v16, %v3198_v19 }
  0x63   :  { %1823 = vmatpush.bf16.msra.mxu1 %v3233_v62  ;;  %v3454_v23 = vld [vmem:[#allocation2 + $0x370] sm:$0xf0]  ;;  %v3329_v26 = vor.u32 %v4495_v20, %v3326_v21  ;;  %v4427_v27 = vld [vmem:[#allocation2 + $0x44] sm:$0xf] }
  0x64   :  { %1837 = vmatpush.bf16.msra.mxu2 %v3361_v63  ;;  %v3054_v28 = vld [vmem:[#allocation2 + $0x50] sm:$0xf0]  ;;  %v4459_v29 = vld [vmem:[#allocation2 + $0x144] sm:$0xf]  ;;  %v3457_v30 = vor.u32 %v4527_v22, %v3454_v23 }
  0x65   :  { %1851 = vmatpush.bf16.msra.mxu3 %v3489_v4  ;;  %v3182_v31 = vld [vmem:[#allocation2 + $0x150] sm:$0xf0]  ;;  %v4491_v32 = vld [vmem:[#allocation2 + $0x244] sm:$0xf]  ;;  %v3057_v36 = vor.u32 %v4427_v27, %v3054_v28 }
  0x66   :  { %1810 = vmatpush.bf16.msra.mxu0 %v3089_v11  ;;  %v3310_v33 = vld [vmem:[#allocation2 + $0x250] sm:$0xf0]  ;;  %v4523_v34 = vld [vmem:[#allocation2 + $0x344] sm:$0xf]  ;;  %v3185_v37 = vor.u32 %v4459_v29, %v3182_v31 }
  0x67   :  { %1824 = vmatpush.bf16.msra.mxu1 %v3217_v12  ;;  %v3438_v35 = vld [vmem:[#allocation2 + $0x350] sm:$0xf0]  ;;  %v3313_v38 = vor.u32 %v4491_v32, %v3310_v33  ;;  %v4423_v40 = vld [vmem:[#allocation2 + $0x24] sm:$0xf] }
  0x68   :  { %1838 = vmatpush.bf16.msra.mxu2 %v3345_v13  ;;  %v3038_v41 = vld [vmem:[#allocation2 + $0x30] sm:$0xf0]  ;;  %v4455_v42 = vld [vmem:[#allocation2 + $0x124] sm:$0xf]  ;;  %v3441_v45 = vor.u32 %v4523_v34, %v3438_v35 }
  0x69   :  { %1852 = vmatpush.bf16.msra.mxu3 %v3473_v18  ;;  %v3166_v46 = vld [vmem:[#allocation2 + $0x130] sm:$0xf0]  ;;  %v4487_v48 = vld [vmem:[#allocation2 + $0x224] sm:$0xf]  ;;  %v3041_v52 = vor.u32 %v4423_v40, %v3038_v41 }
  0x6a   :  { %1811 = vmatpush.bf16.msra.mxu0 %v3073_v24  ;;  %v3294_v49 = vld [vmem:[#allocation2 + $0x230] sm:$0xf0]  ;;  %v4519_v50 = vld [vmem:[#allocation2 + $0x324] sm:$0xf]  ;;  %v3169_v55 = vor.u32 %v4455_v42, %v3166_v46 }
  0x6b   :  { %1825 = vmatpush.bf16.msra.mxu1 %v3201_v25  ;;  %v3422_v51 = vld [vmem:[#allocation2 + $0x330] sm:$0xf0]  ;;  %v4419_v53 = vld [vmem:[#allocation2 + $0x4] sm:$0xf]  ;;  %v3297_v56 = vor.u32 %v4487_v48, %v3294_v49 }
  0x6c   :  { %1839 = vmatpush.bf16.msra.mxu2 %v3329_v26  ;;  %v3022_v54 = vld [vmem:[#allocation2 + $0x10] sm:$0xf0]  ;;  %v4451_v57 = vld [vmem:[#allocation2 + $0x104] sm:$0xf]  ;;  %v3425_v61 = vor.u32 %v4519_v50, %v3422_v51 }
  0x6d   :  { %1853 = vmatpush.bf16.msra.mxu3 %v3457_v30  ;;  %v3150_v59 = vld [vmem:[#allocation2 + $0x110] sm:$0xf0]  ;;  %v4483_v60 = vld [vmem:[#allocation2 + $0x204] sm:$0xf]  ;;  %v3025_v5 = vor.u32 %v4419_v53, %v3022_v54 }
  0x6e   :  { %1812 = vmatpush.bf16.msra.mxu0 %v3057_v36  ;;  %v3278_v62 = vld [vmem:[#allocation2 + $0x210] sm:$0xf0]  ;;  %v4515_v63 = vld [vmem:[#allocation2 + $0x304] sm:$0xf]  ;;  %v3153_v9 = vor.u32 %v4451_v57, %v3150_v59 }
  0x6f   :  { %1826 = vmatpush.bf16.msra.mxu1 %v3185_v37  ;;  %v3406_v0 = vld [vmem:[#allocation2 + $0x310] sm:$0xf0]  ;;  %v4575_v2 = vld [vmem:[#allocation2 + $0x4e4] sm:$0xf]  ;;  %v3281_v11 = vor.u32 %v4483_v60, %v3278_v62 }
  0x70   :  { %1840 = vmatpush.bf16.msra.mxu2 %v3313_v38  ;;  %v3646_v3 = vld [vmem:[#allocation2 + $0x4f0] sm:$0xf0]  ;;  %v4607_v4 = vld [vmem:[#allocation2 + $0x5e4] sm:$0xf]  ;;  %v3409_v14 = vor.u32 %v4515_v63, %v3406_v0 }
  0x71   :  { %1854 = vmatpush.bf16.msra.mxu3 %v3441_v45  ;;  %v3774_v6 = vld [vmem:[#allocation2 + $0x5f0] sm:$0xf0]  ;;  %v4639_v7 = vld [vmem:[#allocation2 + $0x6e4] sm:$0xf]  ;;  %v3649_v15 = vor.u32 %v4575_v2, %v3646_v3 }
  0x72   :  { %1813 = vmatpush.bf16.msra.mxu0 %v3041_v52  ;;  %v3902_v8 = vld [vmem:[#allocation2 + $0x6f0] sm:$0xf0]  ;;  %v4671_v12 = vld [vmem:[#allocation2 + $0x7e4] sm:$0xf]  ;;  %v3777_v16 = vor.u32 %v4607_v4, %v3774_v6 }
  0x73   :  { %1827 = vmatpush.bf16.msra.mxu1 %v3169_v55  ;;  %v4030_v13 = vld [vmem:[#allocation2 + $0x7f0] sm:$0xf0]  ;;  %v3905_v18 = vor.u32 %v4639_v7, %v3902_v8  ;;  %v4571_v19 = vld [vmem:[#allocation2 + $0x4c4] sm:$0xf] }
  0x74   :  { %1841 = vmatpush.bf16.msra.mxu2 %v3297_v56  ;;  %v3630_v20 = vld [vmem:[#allocation2 + $0x4d0] sm:$0xf0]  ;;  %v4603_v21 = vld [vmem:[#allocation2 + $0x5c4] sm:$0xf]  ;;  %v4033_v22 = vor.u32 %v4671_v12, %v4030_v13 }
  0x75   :  { %1855 = vmatpush.bf16.msra.mxu3 %v3425_v61  ;;  %v3758_v23 = vld [vmem:[#allocation2 + $0x5d0] sm:$0xf0]  ;;  %v4635_v24 = vld [vmem:[#allocation2 + $0x6c4] sm:$0xf]  ;;  %v3633_v28 = vor.u32 %v4571_v19, %v3630_v20 }
  0x76   :  { %1814 = vmatpush.bf16.msra.mxu0 %v3025_v5  ;;  %v3886_v25 = vld [vmem:[#allocation2 + $0x6d0] sm:$0xf0]  ;;  %v4667_v26 = vld [vmem:[#allocation2 + $0x7c4] sm:$0xf]  ;;  %v3761_v29 = vor.u32 %v4603_v21, %v3758_v23 }
  0x77   :  { %1828 = vmatpush.bf16.msra.mxu1 %v3153_v9  ;;  %v4014_v27 = vld [vmem:[#allocation2 + $0x7d0] sm:$0xf0]  ;;  %v3889_v30 = vor.u32 %v4635_v24, %v3886_v25  ;;  %v4567_v31 = vld [vmem:[#allocation2 + $0x4a4] sm:$0xf] }
  0x78   :  { %1842 = vmatpush.bf16.msra.mxu2 %v3281_v11  ;;  %v3614_v32 = vld [vmem:[#allocation2 + $0x4b0] sm:$0xf0]  ;;  %v4599_v33 = vld [vmem:[#allocation2 + $0x5a4] sm:$0xf]  ;;  %v4017_v34 = vor.u32 %v4667_v26, %v4014_v27 }
  0x79   :  { %1856 = vmatpush.bf16.msra.mxu3 %v3409_v14  ;;  %v3742_v35 = vld [vmem:[#allocation2 + $0x5b0] sm:$0xf0]  ;;  %v4631_v36 = vld [vmem:[#allocation2 + $0x6a4] sm:$0xf]  ;;  %1815 = vmatmul.bf16.vlgmr.msra.gmra.mxu0 %v5004_v58  ;;  %v3617_v41 = vor.u32 %v4567_v31, %v3614_v32 }
  0x7a   :  { %1863 = vmatpush.bf16.msrb.mxu0 %v3649_v15  ;;  %v3870_v37 = vld [vmem:[#allocation2 + $0x6b0] sm:$0xf0]  ;;  %v4663_v38 = vld [vmem:[#allocation2 + $0x7a4] sm:$0xf]  ;;  %1829 = vmatmul.bf16.vlgmr.msra.gmra.mxu1 %v5022_v10  ;;  %v3745_v42 = vor.u32 %v4599_v33, %v3742_v35 }
  0x7b   :  { %1877 = vmatpush.bf16.msrb.mxu1 %v3777_v16  ;;  %v3998_v40 = vld [vmem:[#allocation2 + $0x7b0] sm:$0xf0]  ;;  %1843 = vmatmul.bf16.vlgmr.msra.gmra.mxu2 %v5009_v1  ;;  %v3873_v45 = vor.u32 %v4631_v36, %v3870_v37  ;;  %v4563_v46 = vld [vmem:[#allocation2 + $0x484] sm:$0xf] }
  0x7c   :  { %1891 = vmatpush.bf16.msrb.mxu2 %v3905_v18  ;;  %1857 = vmatmul.bf16.vlgmr.msra.gmra.mxu3 %v5027_v17  ;;  %v3598_v48 = vld [vmem:[#allocation2 + $0x490] sm:$0xf0]  ;;  %v4595_v49 = vld [vmem:[#allocation2 + $0x584] sm:$0xf]  ;;  %v4001_v50 = vor.u32 %v4663_v38, %v3998_v40 }
  0x7d   :  { %1905 = vmatpush.bf16.msrb.mxu3 %v4033_v22  ;;  %v3726_v51 = vld [vmem:[#allocation2 + $0x590] sm:$0xf0]  ;;  %v4627_v52 = vld [vmem:[#allocation2 + $0x684] sm:$0xf]  ;;  %v3601_v56 = vor.u32 %v4563_v46, %v3598_v48  ;;  %v3140_v48 = vld [vmem:[#allocation2 + $0xe8] sm:$0xf] }
  0x7e   :  { %1864 = vmatpush.bf16.msrb.mxu0 %v3633_v28  ;;  %v3854_v53 = vld [vmem:[#allocation2 + $0x690] sm:$0xf0]  ;;  %v4659_v54 = vld [vmem:[#allocation2 + $0x784] sm:$0xf]  ;;  %v3729_v57 = vor.u32 %v4595_v49, %v3726_v51  ;;  %v4450_v49 = vld [vmem:[#allocation2 + $0xf4] sm:$0xf0] }
  0x7f   :  { %1878 = vmatpush.bf16.msrb.mxu1 %v3761_v29  ;;  %v3982_v55 = vld [vmem:[#allocation2 + $0x790] sm:$0xf0]  ;;  %v3857_v59 = vor.u32 %v4627_v52, %v3854_v53  ;;  %v4559_v60 = vld [vmem:[#allocation2 + $0x464] sm:$0xf]  ;;  %v4482_v52 = vld [vmem:[#allocation2 + $0x1f4] sm:$0xf0] }
  0x80   :  { %1892 = vmatpush.bf16.msrb.mxu2 %v3889_v30  ;;  %v3582_v61 = vld [vmem:[#allocation2 + $0x470] sm:$0xf0]  ;;  %v4591_v62 = vld [vmem:[#allocation2 + $0x564] sm:$0xf]  ;;  %v3985_v63 = vor.u32 %v4659_v54, %v3982_v55  ;;  %v3396_v53 = vld [vmem:[#allocation2 + $0x2e8] sm:$0xf] }
  0x81   :  { %1906 = vmatpush.bf16.msrb.mxu3 %v4017_v34  ;;  %v3710_v0 = vld [vmem:[#allocation2 + $0x570] sm:$0xf0]  ;;  %v4623_v2 = vld [vmem:[#allocation2 + $0x664] sm:$0xf]  ;;  %v3585_v6 = vor.u32 %v4559_v60, %v3582_v61  ;;  %v4514_v54 = vld [vmem:[#allocation2 + $0x2f4] sm:$0xf0]  ;;  %v3141_v61 = vor.u32 %v4450_v49, %v3140_v48 }
  0x82   :  { %1865 = vmatpush.bf16.msrb.mxu0 %v3617_v41  ;;  %v3838_v3 = vld [vmem:[#allocation2 + $0x670] sm:$0xf0]  ;;  %v4655_v4 = vld [vmem:[#allocation2 + $0x764] sm:$0xf]  ;;  %v3713_v7 = vor.u32 %v4591_v62, %v3710_v0  ;;  %v3124_v0 = vld [vmem:[#allocation2 + $0xc8] sm:$0xf] }
  0x83   :  { %1879 = vmatpush.bf16.msrb.mxu1 %v3745_v42  ;;  %v3966_v5 = vld [vmem:[#allocation2 + $0x770] sm:$0xf0]  ;;  %v3841_v8 = vor.u32 %v4623_v2, %v3838_v3  ;;  %v4555_v9 = vld [vmem:[#allocation2 + $0x444] sm:$0xf]  ;;  %v4446_v2 = vld [vmem:[#allocation2 + $0xd4] sm:$0xf0] }
  0x84   :  { %1893 = vmatpush.bf16.msrb.mxu2 %v3873_v45  ;;  %v3566_v11 = vld [vmem:[#allocation2 + $0x450] sm:$0xf0]  ;;  %v4587_v12 = vld [vmem:[#allocation2 + $0x544] sm:$0xf]  ;;  %v3969_v13 = vor.u32 %v4655_v4, %v3966_v5  ;;  %v3252_v3 = vld [vmem:[#allocation2 + $0x1c8] sm:$0xf] }
  0x85   :  { %1907 = vmatpush.bf16.msrb.mxu3 %v4001_v50  ;;  %v3694_v14 = vld [vmem:[#allocation2 + $0x550] sm:$0xf0]  ;;  %v4619_v15 = vld [vmem:[#allocation2 + $0x644] sm:$0xf]  ;;  %v3569_v20 = vor.u32 %v4555_v9, %v3566_v11  ;;  %v3268_v50 = vld [vmem:[#allocation2 + $0x1e8] sm:$0xf]  ;;  %v3125_v11 = vor.u32 %v4446_v2, %v3124_v0 }
  0x86   :  { %1866 = vmatpush.bf16.msrb.mxu0 %v3601_v56  ;;  %v3822_v16 = vld [vmem:[#allocation2 + $0x650] sm:$0xf0]  ;;  %v4651_v18 = vld [vmem:[#allocation2 + $0x744] sm:$0xf]  ;;  %v3697_v21 = vor.u32 %v4587_v12, %v3694_v14  ;;  %v3269_v62 = vor.u32 %v4482_v52, %v3268_v50  ;;  %v4478_v5 = vld [vmem:[#allocation2 + $0x1d4] sm:$0xf0] }
  0x87   :  { %1880 = vmatpush.bf16.msrb.mxu1 %v3729_v57  ;;  %v3950_v19 = vld [vmem:[#allocation2 + $0x750] sm:$0xf0]  ;;  %v3825_v22 = vor.u32 %v4619_v15, %v3822_v16  ;;  %v4551_v23 = vld [vmem:[#allocation2 + $0x424] sm:$0xf]  ;;  %v3524_v57 = vld [vmem:[#allocation2 + $0x3e8] sm:$0xf]  ;;  %v3253_v12 = vor.u32 %v4478_v5, %v3252_v3 }
  0x88   :  { %1894 = vmatpush.bf16.msrb.mxu2 %v3857_v59  ;;  %v3550_v24 = vld [vmem:[#allocation2 + $0x430] sm:$0xf0]  ;;  %v4583_v25 = vld [vmem:[#allocation2 + $0x524] sm:$0xf]  ;;  %v3953_v26 = vor.u32 %v4651_v18, %v3950_v19  ;;  %v4546_v59 = vld [vmem:[#allocation2 + $0x3f4] sm:$0xf0] }
  0x89   :  { %1908 = vmatpush.bf16.msrb.mxu3 %v3985_v63  ;;  %v3678_v27 = vld [vmem:[#allocation2 + $0x530] sm:$0xf0]  ;;  %v4615_v28 = vld [vmem:[#allocation2 + $0x624] sm:$0xf]  ;;  %v3553_v32 = vor.u32 %v4551_v23, %v3550_v24  ;;  %v3397_v63 = vor.u32 %v4514_v54, %v3396_v53  ;;  %v3525_v4 = vor.u32 %v4546_v59, %v3524_v57  ;;  %v4542_v9 = vld [vmem:[#allocation2 + $0x3d4] sm:$0xf0] }
  0x8a   :  { %1867 = vmatpush.bf16.msrb.mxu0 %v3585_v6  ;;  %v3806_v29 = vld [vmem:[#allocation2 + $0x630] sm:$0xf0]  ;;  %v4647_v30 = vld [vmem:[#allocation2 + $0x724] sm:$0xf]  ;;  %v3681_v35 = vor.u32 %v4583_v25, %v3678_v27  ;;  %v3380_v6 = vld [vmem:[#allocation2 + $0x2c8] sm:$0xf] }
  0x8b   :  { %1881 = vmatpush.bf16.msrb.mxu1 %v3713_v7  ;;  %v3934_v31 = vld [vmem:[#allocation2 + $0x730] sm:$0xf0]  ;;  %v4547_v33 = vld [vmem:[#allocation2 + $0x404] sm:$0xf]  ;;  %v3809_v36 = vor.u32 %v4615_v28, %v3806_v29  ;;  %v4510_v7 = vld [vmem:[#allocation2 + $0x2d4] sm:$0xf0] }
  0x8c   :  { %1895 = vmatpush.bf16.msrb.mxu2 %v3841_v8  ;;  %v3534_v34 = vld [vmem:[#allocation2 + $0x410] sm:$0xf0]  ;;  %v4579_v37 = vld [vmem:[#allocation2 + $0x504] sm:$0xf]  ;;  %v3937_v41 = vor.u32 %v4647_v30, %v3934_v31  ;;  %v3508_v8 = vld [vmem:[#allocation2 + $0x3c8] sm:$0xf] }
  0x8d   :  { %1909 = vmatpush.bf16.msrb.mxu3 %v3969_v13  ;;  %v3662_v38 = vld [vmem:[#allocation2 + $0x510] sm:$0xf0]  ;;  %v4611_v40 = vld [vmem:[#allocation2 + $0x604] sm:$0xf]  ;;  %v3537_v51 = vor.u32 %v4547_v33, %v3534_v34  ;;  %v3381_v13 = vor.u32 %v4510_v7, %v3380_v6  ;;  %v3108_v14 = vld [vmem:[#allocation2 + $0xa8] sm:$0xf]  ;;  %v3509_v18 = vor.u32 %v4542_v9, %v3508_v8 }
  0x8e   :  { %1868 = vmatpush.bf16.msrb.mxu0 %v3569_v20  ;;  %v3790_v42 = vld [vmem:[#allocation2 + $0x610] sm:$0xf0]  ;;  %v4643_v45 = vld [vmem:[#allocation2 + $0x704] sm:$0xf]  ;;  %v3665_v55 = vor.u32 %v4579_v37, %v3662_v38  ;;  %v4442_v15 = vld [vmem:[#allocation2 + $0xb4] sm:$0xf0] }
  0x8f   :  { %1882 = vmatpush.bf16.msrb.mxu1 %v3697_v21  ;;  %v3918_v46 = vld [vmem:[#allocation2 + $0x710] sm:$0xf0]  ;;  %v3793_v56 = vor.u32 %v4611_v40, %v3790_v42  ;;  %v3236_v16 = vld [vmem:[#allocation2 + $0x1a8] sm:$0xf]  ;;  %v4474_v19 = vld [vmem:[#allocation2 + $0x1b4] sm:$0xf0]  ;;  %v3109_v24 = vor.u32 %v4442_v15, %v3108_v14 }
  0x90   :  { %1896 = vmatpush.bf16.msrb.mxu2 %v3825_v22  ;;  %v3921_v60 = vor.u32 %v4643_v45, %v3918_v46  ;;  %v3364_v20 = vld [vmem:[#allocation2 + $0x2a8] sm:$0xf]  ;;  %v4506_v21 = vld [vmem:[#allocation2 + $0x2b4] sm:$0xf0]  ;;  %v3237_v25 = vor.u32 %v4474_v19, %v3236_v16 }
  0x91   :  { %1910 = vmatpush.bf16.msrb.mxu3 %v3953_v26  ;;  %v3492_v22 = vld [vmem:[#allocation2 + $0x3a8] sm:$0xf]  ;;  %v4538_v23 = vld [vmem:[#allocation2 + $0x3b4] sm:$0xf0]  ;;  %v3365_v26 = vor.u32 %v4506_v21, %v3364_v20 }
  0x92   :  { %1869 = vmatpush.bf16.msrb.mxu0 %v3553_v32  ;;  %v3092_v27 = vld [vmem:[#allocation2 + $0x88] sm:$0xf]  ;;  %v4438_v28 = vld [vmem:[#allocation2 + $0x94] sm:$0xf0]  ;;  %v3493_v30 = vor.u32 %v4538_v23, %v3492_v22 }
  0x93   :  { %1883 = vmatpush.bf16.msrb.mxu1 %v3681_v35  ;;  %v3220_v29 = vld [vmem:[#allocation2 + $0x188] sm:$0xf]  ;;  %v4470_v31 = vld [vmem:[#allocation2 + $0x194] sm:$0xf0] }
  0x94   :  { %1897 = vmatpush.bf16.msrb.mxu2 %v3809_v36  ;;  %v3348_v32 = vld [vmem:[#allocation2 + $0x288] sm:$0xf]  ;;  %v4502_v33 = vld [vmem:[#allocation2 + $0x294] sm:$0xf0]  ;;  %v3093_v36 = vor.u32 %v4438_v28, %v3092_v27  ;;  %v3221_v37 = vor.u32 %v4470_v31, %v3220_v29 }
  0x95   :  { %1911 = vmatpush.bf16.msrb.mxu3 %v3937_v41  ;;  %v3476_v34 = vld [vmem:[#allocation2 + $0x388] sm:$0xf]  ;;  %v4534_v35 = vld [vmem:[#allocation2 + $0x394] sm:$0xf0]  ;;  %v3349_v38 = vor.u32 %v4502_v33, %v3348_v32 }
  0x96   :  { %1870 = vmatpush.bf16.msrb.mxu0 %v3537_v51  ;;  %v3076_v40 = vld [vmem:[#allocation2 + $0x68] sm:$0xf]  ;;  %v4434_v41 = vld [vmem:[#allocation2 + $0x74] sm:$0xf0]  ;;  %v3477_v45 = vor.u32 %v4534_v35, %v3476_v34 }
  0x97   :  { %1884 = vmatpush.bf16.msrb.mxu1 %v3665_v55  ;;  %v3204_v42 = vld [vmem:[#allocation2 + $0x168] sm:$0xf]  ;;  %v4466_v46 = vld [vmem:[#allocation2 + $0x174] sm:$0xf0]  ;;  %v3077_v52 = vor.u32 %v4434_v41, %v3076_v40 }
  0x98   :  { %1898 = vmatpush.bf16.msrb.mxu2 %v3793_v56  ;;  %v3332_v48 = vld [vmem:[#allocation2 + $0x268] sm:$0xf]  ;;  %v4498_v49 = vld [vmem:[#allocation2 + $0x274] sm:$0xf0]  ;;  %v3205_v53 = vor.u32 %v4466_v46, %v3204_v42 }
  0x99   :  { %1912 = vmatpush.bf16.msrb.mxu3 %v3921_v60  ;;  %1871 = vmatmul.bf16.vlgmr.msrb.gmra.mxu0 %v5055_v39  ;;  %v3460_v50 = vld [vmem:[#allocation2 + $0x368] sm:$0xf]  ;;  %v4530_v51 = vld [vmem:[#allocation2 + $0x374] sm:$0xf0]  ;;  %v3333_v54 = vor.u32 %v4498_v49, %v3332_v48 }
  0x9a   :  { %1919 = vmatpush.bf16.msra.mxu0 %v3141_v61  ;;  %1885 = vmatmul.bf16.vlgmr.msrb.gmra.mxu1 %v5059_v44  ;;  %v3060_v55 = vld [vmem:[#allocation2 + $0x48] sm:$0xf]  ;;  %v4430_v56 = vld [vmem:[#allocation2 + $0x54] sm:$0xf0]  ;;  %v3461_v59 = vor.u32 %v4530_v51, %v3460_v50 }
  0x9b   :  { %1933 = vmatpush.bf16.msra.mxu1 %v3269_v62  ;;  %1899 = vmatmul.bf16.vlgmr.msrb.gmra.mxu2 %v5057_v43  ;;  %v3188_v57 = vld [vmem:[#allocation2 + $0x148] sm:$0xf]  ;;  %v4462_v60 = vld [vmem:[#allocation2 + $0x154] sm:$0xf0]  ;;  %v3061_v2 = vor.u32 %v4430_v56, %v3060_v55 }
  0x9c   :  { %1947 = vmatpush.bf16.msra.mxu2 %v3397_v63  ;;  %1913 = vmatmul.bf16.vlgmr.msrb.gmra.mxu3 %v5061_v47  ;;  %v3316_v61 = vld [vmem:[#allocation2 + $0x248] sm:$0xf]  ;;  %v4494_v62 = vld [vmem:[#allocation2 + $0x254] sm:$0xf0]  ;;  %v3189_v3 = vor.u32 %v4462_v60, %v3188_v57 }
  0x9d   :  { %1961 = vmatpush.bf16.msra.mxu3 %v3525_v4  ;;  %v3444_v63 = vld [vmem:[#allocation2 + $0x348] sm:$0xf]  ;;  %v4526_v0 = vld [vmem:[#allocation2 + $0x354] sm:$0xf0]  ;;  %v3317_v4 = vor.u32 %v4494_v62, %v3316_v61 }
  0x9e   :  { %1920 = vmatpush.bf16.msra.mxu0 %v3125_v11  ;;  %v3044_v5 = vld [vmem:[#allocation2 + $0x28] sm:$0xf]  ;;  %v4426_v6 = vld [vmem:[#allocation2 + $0x34] sm:$0xf0]  ;;  %v3445_v8 = vor.u32 %v4526_v0, %v3444_v63 }
  0x9f   :  { %1934 = vmatpush.bf16.msra.mxu1 %v3253_v12  ;;  %v3172_v7 = vld [vmem:[#allocation2 + $0x128] sm:$0xf]  ;;  %v4458_v9 = vld [vmem:[#allocation2 + $0x134] sm:$0xf0]  ;;  %v3045_v15 = vor.u32 %v4426_v6, %v3044_v5 }
  0xa0   :  { %1948 = vmatpush.bf16.msra.mxu2 %v3381_v13  ;;  %v3300_v11 = vld [vmem:[#allocation2 + $0x228] sm:$0xf]  ;;  %v4490_v12 = vld [vmem:[#allocation2 + $0x234] sm:$0xf0]  ;;  %v3173_v19 = vor.u32 %v4458_v9, %v3172_v7 }
  0xa1   :  { %1962 = vmatpush.bf16.msra.mxu3 %v3509_v18  ;;  %v3428_v13 = vld [vmem:[#allocation2 + $0x328] sm:$0xf]  ;;  %v4522_v14 = vld [vmem:[#allocation2 + $0x334] sm:$0xf0]  ;;  %v3301_v20 = vor.u32 %v4490_v12, %v3300_v11 }
  0xa2   :  { %1921 = vmatpush.bf16.msra.mxu0 %v3109_v24  ;;  %v3028_v16 = vld [vmem:[#allocation2 + $0x8] sm:$0xf]  ;;  %v4422_v18 = vld [vmem:[#allocation2 + $0x14] sm:$0xf0]  ;;  %v3429_v24 = vor.u32 %v4522_v14, %v3428_v13 }
  0xa3   :  { %1935 = vmatpush.bf16.msra.mxu1 %v3237_v25  ;;  %v3156_v21 = vld [vmem:[#allocation2 + $0x108] sm:$0xf]  ;;  %v4454_v22 = vld [vmem:[#allocation2 + $0x114] sm:$0xf0]  ;;  %v3029_v31 = vor.u32 %v4422_v18, %v3028_v16 }
  0xa4   :  { %1949 = vmatpush.bf16.msra.mxu2 %v3365_v26  ;;  %v3284_v23 = vld [vmem:[#allocation2 + $0x208] sm:$0xf]  ;;  %v4486_v25 = vld [vmem:[#allocation2 + $0x214] sm:$0xf0]  ;;  %v3157_v35 = vor.u32 %v4454_v22, %v3156_v21 }
  0xa5   :  { %1963 = vmatpush.bf16.msra.mxu3 %v3493_v30  ;;  %v3412_v26 = vld [vmem:[#allocation2 + $0x308] sm:$0xf]  ;;  %v4518_v27 = vld [vmem:[#allocation2 + $0x314] sm:$0xf0] }
  0xa6   :  { %1922 = vmatpush.bf16.msra.mxu0 %v3093_v36  ;;  %v3652_v28 = vld [vmem:[#allocation2 + $0x4e8] sm:$0xf]  ;;  %v4578_v29 = vld [vmem:[#allocation2 + $0x4f4] sm:$0xf0]  ;;  %v3285_v36 = vor.u32 %v4486_v25, %v3284_v23  ;;  %v3413_v40 = vor.u32 %v4518_v27, %v3412_v26 }
  0xa7   :  { %1936 = vmatpush.bf16.msra.mxu1 %v3221_v37  ;;  %v3780_v30 = vld [vmem:[#allocation2 + $0x5e8] sm:$0xf]  ;;  %v4610_v32 = vld [vmem:[#allocation2 + $0x5f4] sm:$0xf0]  ;;  %v3653_v41 = vor.u32 %v4578_v29, %v3652_v28 }
  0xa8   :  { %1950 = vmatpush.bf16.msra.mxu2 %v3349_v38  ;;  %v3908_v33 = vld [vmem:[#allocation2 + $0x6e8] sm:$0xf]  ;;  %v4642_v34 = vld [vmem:[#allocation2 + $0x6f4] sm:$0xf0]  ;;  %v3781_v42 = vor.u32 %v4610_v32, %v3780_v30 }
  0xa9   :  { %1964 = vmatpush.bf16.msra.mxu3 %v3477_v45  ;;  %v4036_v37 = vld [vmem:[#allocation2 + $0x7e8] sm:$0xf]  ;;  %v4674_v38 = vld [vmem:[#allocation2 + $0x7f4] sm:$0xf0]  ;;  %v3909_v45 = vor.u32 %v4642_v34, %v3908_v33 }
  0xaa   :  { %1923 = vmatpush.bf16.msra.mxu0 %v3077_v52  ;;  %v3636_v46 = vld [vmem:[#allocation2 + $0x4c8] sm:$0xf]  ;;  %v4574_v48 = vld [vmem:[#allocation2 + $0x4d4] sm:$0xf0]  ;;  %v4037_v50 = vor.u32 %v4674_v38, %v4036_v37 }
  0xab   :  { %1937 = vmatpush.bf16.msra.mxu1 %v3205_v53  ;;  %v3764_v49 = vld [vmem:[#allocation2 + $0x5c8] sm:$0xf]  ;;  %v4606_v51 = vld [vmem:[#allocation2 + $0x5d4] sm:$0xf0]  ;;  %v3637_v56 = vor.u32 %v4574_v48, %v3636_v46 }
  0xac   :  { %1951 = vmatpush.bf16.msra.mxu2 %v3333_v54  ;;  %v3892_v52 = vld [vmem:[#allocation2 + $0x6c8] sm:$0xf]  ;;  %v4638_v53 = vld [vmem:[#allocation2 + $0x6d4] sm:$0xf0]  ;;  %v3765_v57 = vor.u32 %v4606_v51, %v3764_v49 }
  0xad   :  { %1965 = vmatpush.bf16.msra.mxu3 %v3461_v59  ;;  %v4020_v54 = vld [vmem:[#allocation2 + $0x7c8] sm:$0xf]  ;;  %v4670_v55 = vld [vmem:[#allocation2 + $0x7d4] sm:$0xf0]  ;;  %v3893_v59 = vor.u32 %v4638_v53, %v3892_v52 }
  0xae   :  { %1924 = vmatpush.bf16.msra.mxu0 %v3061_v2  ;;  %v3620_v60 = vld [vmem:[#allocation2 + $0x4a8] sm:$0xf]  ;;  %v4570_v61 = vld [vmem:[#allocation2 + $0x4b4] sm:$0xf0]  ;;  %v4021_v63 = vor.u32 %v4670_v55, %v4020_v54 }
  0xaf   :  { %1938 = vmatpush.bf16.msra.mxu1 %v3189_v3  ;;  %v3748_v62 = vld [vmem:[#allocation2 + $0x5a8] sm:$0xf]  ;;  %v4602_v0 = vld [vmem:[#allocation2 + $0x5b4] sm:$0xf0]  ;;  %v3621_v6 = vor.u32 %v4570_v61, %v3620_v60 }
  0xb0   :  { %1952 = vmatpush.bf16.msra.mxu2 %v3317_v4  ;;  %v3876_v2 = vld [vmem:[#allocation2 + $0x6a8] sm:$0xf]  ;;  %v4634_v3 = vld [vmem:[#allocation2 + $0x6b4] sm:$0xf0]  ;;  %v3749_v7 = vor.u32 %v4602_v0, %v3748_v62 }
  0xb1   :  { %1966 = vmatpush.bf16.msra.mxu3 %v3445_v8  ;;  %v4004_v4 = vld [vmem:[#allocation2 + $0x7a8] sm:$0xf]  ;;  %v4666_v5 = vld [vmem:[#allocation2 + $0x7b4] sm:$0xf0]  ;;  %v3877_v8 = vor.u32 %v4634_v3, %v3876_v2 }
  0xb2   :  { %1925 = vmatpush.bf16.msra.mxu0 %v3045_v15  ;;  %v3604_v9 = vld [vmem:[#allocation2 + $0x488] sm:$0xf]  ;;  %v4566_v11 = vld [vmem:[#allocation2 + $0x494] sm:$0xf0]  ;;  %v4005_v13 = vor.u32 %v4666_v5, %v4004_v4 }
  0xb3   :  { %1939 = vmatpush.bf16.msra.mxu1 %v3173_v19  ;;  %v3732_v12 = vld [vmem:[#allocation2 + $0x588] sm:$0xf]  ;;  %v4598_v14 = vld [vmem:[#allocation2 + $0x594] sm:$0xf0] }
  0xb4   :  { %1953 = vmatpush.bf16.msra.mxu2 %v3301_v20  ;;  %v3860_v15 = vld [vmem:[#allocation2 + $0x688] sm:$0xf]  ;;  %v4630_v16 = vld [vmem:[#allocation2 + $0x694] sm:$0xf0]  ;;  %v3605_v20 = vor.u32 %v4566_v11, %v3604_v9  ;;  %v3733_v21 = vor.u32 %v4598_v14, %v3732_v12  ;;  %v4448_v11 = vld [vmem:[#allocation2 + $0xec] sm:$0xf] }
  0xb5   :  { %1967 = vmatpush.bf16.msra.mxu3 %v3429_v24  ;;  %v3988_v18 = vld [vmem:[#allocation2 + $0x788] sm:$0xf]  ;;  %v4662_v19 = vld [vmem:[#allocation2 + $0x794] sm:$0xf0]  ;;  %v3861_v22 = vor.u32 %v4630_v16, %v3860_v15  ;;  %v3142_v12 = vld [vmem:[#allocation2 + $0xf8] sm:$0xf0] }
  0xb6   :  { %1926 = vmatpush.bf16.msra.mxu0 %v3029_v31  ;;  %v3588_v23 = vld [vmem:[#allocation2 + $0x468] sm:$0xf]  ;;  %v4562_v24 = vld [vmem:[#allocation2 + $0x474] sm:$0xf0]  ;;  %v3989_v26 = vor.u32 %v4662_v19, %v3988_v18  ;;  %v3270_v15 = vld [vmem:[#allocation2 + $0x1f8] sm:$0xf0] }
  0xb7   :  { %1940 = vmatpush.bf16.msra.mxu1 %v3157_v35  ;;  %v3716_v25 = vld [vmem:[#allocation2 + $0x568] sm:$0xf]  ;;  %v4594_v27 = vld [vmem:[#allocation2 + $0x574] sm:$0xf0]  ;;  %v3589_v32 = vor.u32 %v4562_v24, %v3588_v23  ;;  %v4512_v16 = vld [vmem:[#allocation2 + $0x2ec] sm:$0xf]  ;;  %v3145_v24 = vor.u32 %v4448_v11, %v3142_v12 }
  0xb8   :  { %1954 = vmatpush.bf16.msra.mxu2 %v3285_v36  ;;  %v3844_v28 = vld [vmem:[#allocation2 + $0x668] sm:$0xf]  ;;  %v4626_v29 = vld [vmem:[#allocation2 + $0x674] sm:$0xf0]  ;;  %v3717_v33 = vor.u32 %v4594_v27, %v3716_v25  ;;  %v3398_v18 = vld [vmem:[#allocation2 + $0x2f8] sm:$0xf0] }
  0xb9   :  { %1968 = vmatpush.bf16.msra.mxu3 %v3413_v40  ;;  %1927 = vmatmul.bf16.vlgmr.msra.gmra.mxu0 %v5004_v58  ;;  %v3972_v30 = vld [vmem:[#allocation2 + $0x768] sm:$0xf]  ;;  %v4658_v31 = vld [vmem:[#allocation2 + $0x774] sm:$0xf0]  ;;  %v3845_v34 = vor.u32 %v4626_v29, %v3844_v28  ;;  %v4444_v27 = vld [vmem:[#allocation2 + $0xcc] sm:$0xf] }
  0xba   :  { %1975 = vmatpush.bf16.msrb.mxu0 %v3653_v41  ;;  %1941 = vmatmul.bf16.vlgmr.msra.gmra.mxu1 %v5022_v10  ;;  %v3572_v35 = vld [vmem:[#allocation2 + $0x448] sm:$0xf]  ;;  %v4558_v36 = vld [vmem:[#allocation2 + $0x454] sm:$0xf0]  ;;  %v3973_v38 = vor.u32 %v4658_v31, %v3972_v30  ;;  %v3126_v28 = vld [vmem:[#allocation2 + $0xd8] sm:$0xf0] }
  0xbb   :  { %1989 = vmatpush.bf16.msrb.mxu1 %v3781_v42  ;;  %1955 = vmatmul.bf16.vlgmr.msra.gmra.mxu2 %v5009_v1  ;;  %v3700_v37 = vld [vmem:[#allocation2 + $0x548] sm:$0xf]  ;;  %v4590_v40 = vld [vmem:[#allocation2 + $0x554] sm:$0xf0]  ;;  %v3573_v48 = vor.u32 %v4558_v36, %v3572_v35  ;;  %v4476_v29 = vld [vmem:[#allocation2 + $0x1cc] sm:$0xf]  ;;  %v3129_v36 = vor.u32 %v4444_v27, %v3126_v28 }
  0xbc   :  { %2003 = vmatpush.bf16.msrb.mxu2 %v3909_v45  ;;  %1969 = vmatmul.bf16.vlgmr.msra.gmra.mxu3 %v5027_v17  ;;  %v3828_v41 = vld [vmem:[#allocation2 + $0x648] sm:$0xf]  ;;  %v4622_v42 = vld [vmem:[#allocation2 + $0x654] sm:$0xf0]  ;;  %v3701_v49 = vor.u32 %v4590_v40, %v3700_v37  ;;  %v3254_v31 = vld [vmem:[#allocation2 + $0x1d8] sm:$0xf0] }
  0xbd   :  { %2017 = vmatpush.bf16.msrb.mxu3 %v4037_v50  ;;  %v3956_v45 = vld [vmem:[#allocation2 + $0x748] sm:$0xf]  ;;  %v4654_v46 = vld [vmem:[#allocation2 + $0x754] sm:$0xf0]  ;;  %v3829_v50 = vor.u32 %v4622_v42, %v3828_v41  ;;  %v3510_v35 = vld [vmem:[#allocation2 + $0x3d8] sm:$0xf0]  ;;  %v3257_v37 = vor.u32 %v4476_v29, %v3254_v31 }
  0xbe   :  { %1976 = vmatpush.bf16.msrb.mxu0 %v3637_v56  ;;  %v3556_v51 = vld [vmem:[#allocation2 + $0x428] sm:$0xf]  ;;  %v4554_v52 = vld [vmem:[#allocation2 + $0x434] sm:$0xf0]  ;;  %v3957_v54 = vor.u32 %v4654_v46, %v3956_v45  ;;  %v4440_v40 = vld [vmem:[#allocation2 + $0xac] sm:$0xf] }
  0xbf   :  { %1990 = vmatpush.bf16.msrb.mxu1 %v3765_v57  ;;  %v3684_v53 = vld [vmem:[#allocation2 + $0x528] sm:$0xf]  ;;  %v4586_v55 = vld [vmem:[#allocation2 + $0x534] sm:$0xf0]  ;;  %v3557_v61 = vor.u32 %v4554_v52, %v3556_v51  ;;  %v3110_v41 = vld [vmem:[#allocation2 + $0xb8] sm:$0xf0] }
  0xc0   :  { %2004 = vmatpush.bf16.msrb.mxu2 %v3893_v59  ;;  %v3812_v56 = vld [vmem:[#allocation2 + $0x628] sm:$0xf]  ;;  %v4618_v57 = vld [vmem:[#allocation2 + $0x634] sm:$0xf0]  ;;  %v3685_v0 = vor.u32 %v4586_v55, %v3684_v53  ;;  %v4472_v42 = vld [vmem:[#allocation2 + $0x1ac] sm:$0xf]  ;;  %v3113_v52 = vor.u32 %v4440_v40, %v3110_v41 }
  0xc1   :  { %2018 = vmatpush.bf16.msrb.mxu3 %v4021_v63  ;;  %v3940_v59 = vld [vmem:[#allocation2 + $0x728] sm:$0xf]  ;;  %v4650_v60 = vld [vmem:[#allocation2 + $0x734] sm:$0xf0]  ;;  %v3813_v2 = vor.u32 %v4618_v57, %v3812_v56  ;;  %v3238_v46 = vld [vmem:[#allocation2 + $0x1b8] sm:$0xf0] }
  0xc2   :  { %1977 = vmatpush.bf16.msrb.mxu0 %v3621_v6  ;;  %v3540_v62 = vld [vmem:[#allocation2 + $0x408] sm:$0xf]  ;;  %v4550_v63 = vld [vmem:[#allocation2 + $0x414] sm:$0xf0]  ;;  %v3941_v6 = vor.u32 %v4650_v60, %v3940_v59  ;;  %v3494_v51 = vld [vmem:[#allocation2 + $0x3b8] sm:$0xf0]  ;;  %v3241_v53 = vor.u32 %v4472_v42, %v3238_v46 }
  0xc3   :  { %1991 = vmatpush.bf16.msrb.mxu1 %v3749_v7  ;;  %v3668_v3 = vld [vmem:[#allocation2 + $0x508] sm:$0xf]  ;;  %v4582_v4 = vld [vmem:[#allocation2 + $0x514] sm:$0xf0]  ;;  %v3541_v14 = vor.u32 %v4550_v63, %v3540_v62  ;;  %v4436_v55 = vld [vmem:[#allocation2 + $0x8c] sm:$0xf] }
  0xc4   :  { %2005 = vmatpush.bf16.msrb.mxu2 %v3877_v8  ;;  %v3796_v5 = vld [vmem:[#allocation2 + $0x608] sm:$0xf]  ;;  %v4614_v7 = vld [vmem:[#allocation2 + $0x614] sm:$0xf0]  ;;  %v3669_v19 = vor.u32 %v4582_v4, %v3668_v3  ;;  %v3094_v56 = vld [vmem:[#allocation2 + $0x98] sm:$0xf0]  ;;  %v5083_v3 = vpop.f32.mrf.mxu0 }
  0xc5   :  { %2019 = vmatpush.bf16.msrb.mxu3 %v4005_v13  ;;  %v3924_v8 = vld [vmem:[#allocation2 + $0x708] sm:$0xf]  ;;  %v4646_v9 = vld [vmem:[#allocation2 + $0x714] sm:$0xf0]  ;;  %v4480_v13 = vld [vmem:[#allocation2 + $0x1ec] sm:$0xf] }
  0xc6   :  { %1978 = vmatpush.bf16.msrb.mxu0 %v3605_v20  ;;  %v3797_v20 = vor.u32 %v4614_v7, %v3796_v5  ;;  %v3925_v23 = vor.u32 %v4646_v9, %v3924_v8  ;;  %v3273_v25 = vor.u32 %v4480_v13, %v3270_v15  ;;  %v4468_v57 = vld [vmem:[#allocation2 + $0x18c] sm:$0xf]  ;;  %v3222_v60 = vld [vmem:[#allocation2 + $0x198] sm:$0xf0]  ;;  %v5085_v9 = vpop.f32.mrf.mxu1 }
  0xc7   :  { %1992 = vmatpush.bf16.msrb.mxu1 %v3733_v21  ;;  %v4544_v21 = vld [vmem:[#allocation2 + $0x3ec] sm:$0xf]  ;;  %v3350_v62 = vld [vmem:[#allocation2 + $0x298] sm:$0xf0]  ;;  %v3225_v4 = vor.u32 %v4468_v57, %v3222_v60 }
  0xc8   :  { %2006 = vmatpush.bf16.msrb.mxu2 %v3861_v22  ;;  %v3526_v22 = vld [vmem:[#allocation2 + $0x3f8] sm:$0xf0]  ;;  %v4532_v63 = vld [vmem:[#allocation2 + $0x38c] sm:$0xf] }
  0xc9   :  { %2020 = vmatpush.bf16.msrb.mxu3 %v3989_v26  ;;  %v3401_v26 = vor.u32 %v4512_v16, %v3398_v18  ;;  %v3529_v30 = vor.u32 %v4544_v21, %v3526_v22  ;;  %v3078_v7 = vld [vmem:[#allocation2 + $0x78] sm:$0xf0]  ;;  %v4464_v8 = vld [vmem:[#allocation2 + $0x16c] sm:$0xf] }
  0xca   :  { %1979 = vmatpush.bf16.msrb.mxu0 %v3589_v32  ;;  %v4508_v32 = vld [vmem:[#allocation2 + $0x2cc] sm:$0xf]  ;;  %v3206_v12 = vld [vmem:[#allocation2 + $0x178] sm:$0xf0] }
  0xcb   :  { %1993 = vmatpush.bf16.msrb.mxu1 %v3717_v33  ;;  %v3382_v33 = vld [vmem:[#allocation2 + $0x2d8] sm:$0xf0]  ;;  %v4496_v13 = vld [vmem:[#allocation2 + $0x26c] sm:$0xf] }
  0xcc   :  { %2007 = vmatpush.bf16.msrb.mxu2 %v3845_v34  ;;  %v4540_v34 = vld [vmem:[#allocation2 + $0x3cc] sm:$0xf]  ;;  %v3462_v16 = vld [vmem:[#allocation2 + $0x378] sm:$0xf0] }
  0xcd   :  { %2021 = vmatpush.bf16.msrb.mxu3 %v3973_v38  ;;  %v3385_v38 = vor.u32 %v4508_v32, %v3382_v33  ;;  %v3513_v45 = vor.u32 %v4540_v34, %v3510_v35  ;;  %v4528_v15 = vld [vmem:[#allocation2 + $0x36c] sm:$0xf]  ;;  %v3062_v22 = vld [vmem:[#allocation2 + $0x58] sm:$0xf0]  ;;  %v5089_v32 = vpop.f32.mrf.mxu3 }
  0xce   :  { %1980 = vmatpush.bf16.msrb.mxu0 %v3573_v48  ;;  %v4504_v48 = vld [vmem:[#allocation2 + $0x2ac] sm:$0xf]  ;;  %v3318_v27 = vld [vmem:[#allocation2 + $0x258] sm:$0xf0] }
  0xcf   :  { %1994 = vmatpush.bf16.msrb.mxu1 %v3701_v49  ;;  %v3366_v49 = vld [vmem:[#allocation2 + $0x2b8] sm:$0xf0]  ;;  %v4428_v21 = vld [vmem:[#allocation2 + $0x4c] sm:$0xf] }
  0xd0   :  { %2008 = vmatpush.bf16.msrb.mxu2 %v3829_v50  ;;  %v4536_v50 = vld [vmem:[#allocation2 + $0x3ac] sm:$0xf]  ;;  %v3446_v29 = vld [vmem:[#allocation2 + $0x358] sm:$0xf0]  ;;  %v3065_v31 = vor.u32 %v4428_v21, %v3062_v22 }
  0xd1   :  { %2022 = vmatpush.bf16.msrb.mxu3 %v3957_v54  ;;  %v3369_v54 = vor.u32 %v4504_v48, %v3366_v49  ;;  %v3497_v59 = vor.u32 %v4536_v50, %v3494_v51  ;;  %v4524_v28 = vld [vmem:[#allocation2 + $0x34c] sm:$0xf]  ;;  %v3174_v40 = vld [vmem:[#allocation2 + $0x138] sm:$0xf0]  ;;  %v5093_v49 = vpop.f32.mrf.mxu1 }
  0xd2   :  { %1981 = vmatpush.bf16.msrb.mxu0 %v3557_v61  ;;  %v4500_v61 = vld [vmem:[#allocation2 + $0x28c] sm:$0xf]  ;;  %v3302_v42 = vld [vmem:[#allocation2 + $0x238] sm:$0xf0] }
  0xd3   :  { %1995 = vmatpush.bf16.msrb.mxu1 %v3685_v0  ;;  %v3478_v0 = vld [vmem:[#allocation2 + $0x398] sm:$0xf0]  ;;  %v3353_v5 = vor.u32 %v4500_v61, %v3350_v62  ;;  %v4424_v35 = vld [vmem:[#allocation2 + $0x2c] sm:$0xf] }
  0xd4   :  { %2009 = vmatpush.bf16.msrb.mxu2 %v3813_v2  ;;  %v3097_v2 = vor.u32 %v4436_v55, %v3094_v56  ;;  %v3481_v11 = vor.u32 %v4532_v63, %v3478_v0  ;;  %v4488_v41 = vld [vmem:[#allocation2 + $0x22c] sm:$0xf]  ;;  %v3430_v48 = vld [vmem:[#allocation2 + $0x338] sm:$0xf0] }
  0xd5   :  { %2023 = vmatpush.bf16.msrb.mxu3 %v3941_v6  ;;  %v4432_v6 = vld [vmem:[#allocation2 + $0x6c] sm:$0xf]  ;;  %v3158_v56 = vld [vmem:[#allocation2 + $0x118] sm:$0xf0] }
  0xd6   :  { %1982 = vmatpush.bf16.msrb.mxu0 %v3541_v14  ;;  %v3334_v14 = vld [vmem:[#allocation2 + $0x278] sm:$0xf0]  ;;  %v3081_v18 = vor.u32 %v4432_v6, %v3078_v7  ;;  %v4520_v46 = vld [vmem:[#allocation2 + $0x32c] sm:$0xf] }
  0xd7   :  { %1996 = vmatpush.bf16.msrb.mxu1 %v3669_v19  ;;  %v3209_v19 = vor.u32 %v4464_v8, %v3206_v12  ;;  %v4420_v51 = vld [vmem:[#allocation2 + $0xc] sm:$0xf]  ;;  %v3286_v60 = vld [vmem:[#allocation2 + $0x218] sm:$0xf0] }
  0xd8   :  { %2010 = vmatpush.bf16.msrb.mxu2 %v3797_v20  ;;  %v3337_v20 = vor.u32 %v4496_v13, %v3334_v14  ;;  %v4452_v55 = vld [vmem:[#allocation2 + $0x10c] sm:$0xf]  ;;  %v3414_v62 = vld [vmem:[#allocation2 + $0x318] sm:$0xf0] }
  0xd9   :  { %2024 = vmatpush.bf16.msrb.mxu3 %v3925_v23  ;;  %1983 = vmatmul.bf16.vlgmr.msrb.gmra.mxu0 %v5055_v39  ;;  %v4460_v23 = vld [vmem:[#allocation2 + $0x14c] sm:$0xf]  ;;  %v3654_v0 = vld [vmem:[#allocation2 + $0x4f8] sm:$0xf0]  ;;  %v3161_v8 = vor.u32 %v4452_v55, %v3158_v56 }
  0xda   :  { %2031 = vmatpush.bf16.msra.mxu0 %v3145_v24  ;;  %1997 = vmatmul.bf16.vlgmr.msrb.gmra.mxu1 %v5059_v44  ;;  %v3465_v24 = vor.u32 %v4528_v15, %v3462_v16  ;;  %v4484_v57 = vld [vmem:[#allocation2 + $0x20c] sm:$0xf]  ;;  %v3910_v7 = vld [vmem:[#allocation2 + $0x6f8] sm:$0xf0] }
  0xdb   :  { %2045 = vmatpush.bf16.msra.mxu1 %v3273_v25  ;;  %2011 = vmatmul.bf16.vlgmr.msrb.gmra.mxu2 %v5057_v43  ;;  %v3190_v25 = vld [vmem:[#allocation2 + $0x158] sm:$0xf0]  ;;  %v4516_v61 = vld [vmem:[#allocation2 + $0x30c] sm:$0xf] }
  0xdc   :  { %2059 = vmatpush.bf16.msra.mxu2 %v3401_v26  ;;  %2025 = vmatmul.bf16.vlgmr.msrb.gmra.mxu3 %v5061_v47  ;;  %v4492_v26 = vld [vmem:[#allocation2 + $0x24c] sm:$0xf]  ;;  %v3193_v33 = vor.u32 %v4460_v23, %v3190_v25  ;;  %v4038_v13 = vld [vmem:[#allocation2 + $0x7f8] sm:$0xf0]  ;;  %v3417_v15 = vor.u32 %v4516_v61, %v3414_v62 }
  0xdd   :  { %2073 = vmatpush.bf16.msra.mxu3 %v3529_v30  ;;  %v5087_v30 = vpop.f32.mrf.mxu2  ;;  %v3321_v34 = vor.u32 %v4492_v26, %v3318_v27  ;;  %v4576_v63 = vld [vmem:[#allocation2 + $0x4ec] sm:$0xf]  ;;  %v3638_v22 = vld [vmem:[#allocation2 + $0x4d8] sm:$0xf0] }
  0xde   :  { %2032 = vmatpush.bf16.msra.mxu0 %v3129_v36  ;;  %v3046_v36 = vld [vmem:[#allocation2 + $0x38] sm:$0xf0]  ;;  %v4640_v6 = vld [vmem:[#allocation2 + $0x6ec] sm:$0xf]  ;;  %v3657_v16 = vor.u32 %v4576_v63, %v3654_v0 }
  0xdf   :  { %2046 = vmatpush.bf16.msra.mxu1 %v3257_v37  ;;  %v4456_v37 = vld [vmem:[#allocation2 + $0x12c] sm:$0xf]  ;;  %v3049_v50 = vor.u32 %v4424_v35, %v3046_v36  ;;  %v3766_v25 = vld [vmem:[#allocation2 + $0x5d8] sm:$0xf0] }
  0xe0   :  { %2060 = vmatpush.bf16.msra.mxu2 %v3385_v38  ;;  %v3449_v38 = vor.u32 %v4524_v28, %v3446_v29  ;;  %v4672_v12 = vld [vmem:[#allocation2 + $0x7ec] sm:$0xf]  ;;  %v3894_v27 = vld [vmem:[#allocation2 + $0x6d8] sm:$0xf0] }
  0xe1   :  { %2074 = vmatpush.bf16.msra.mxu3 %v3513_v45  ;;  %v5091_v45 = vpop.f32.mrf.mxu0  ;;  %v4572_v21 = vld [vmem:[#allocation2 + $0x4cc] sm:$0xf]  ;;  %v3606_v56 = vld [vmem:[#allocation2 + $0x498] sm:$0xf0] }
  0xe2   :  { %2033 = vmatpush.bf16.msra.mxu0 %v3113_v52  ;;  %v3030_v52 = vld [vmem:[#allocation2 + $0x18] sm:$0xf0]  ;;  %v4604_v23 = vld [vmem:[#allocation2 + $0x5cc] sm:$0xf] }
  0xe3   :  { %2047 = vmatpush.bf16.msra.mxu1 %v3241_v53  ;;  %v3177_v53 = vor.u32 %v4456_v37, %v3174_v40  ;;  %v4636_v26 = vld [vmem:[#allocation2 + $0x6cc] sm:$0xf]  ;;  %v3769_v35 = vor.u32 %v4604_v23, %v3766_v25  ;;  %v3990_v63 = vld [vmem:[#allocation2 + $0x798] sm:$0xf0] }
  0xe4   :  { %2061 = vmatpush.bf16.msra.mxu2 %v3369_v54  ;;  %v3305_v54 = vor.u32 %v4488_v41, %v3302_v42  ;;  %v4668_v29 = vld [vmem:[#allocation2 + $0x7cc] sm:$0xf]  ;;  %v3897_v36 = vor.u32 %v4636_v26, %v3894_v27  ;;  %v3750_v42 = vld [vmem:[#allocation2 + $0x5b8] sm:$0xf0] }
  0xe5   :  { %2075 = vmatpush.bf16.msra.mxu3 %v3497_v59  ;;  %v3433_v59 = vor.u32 %v4520_v46, %v3430_v48  ;;  %v5095_v14 = vpop.f32.mrf.mxu2  ;;  %v4568_v37 = vld [vmem:[#allocation2 + $0x4ac] sm:$0xf]  ;;  %v3878_v48 = vld [vmem:[#allocation2 + $0x6b8] sm:$0xf0] }
  0xe6   :  { %2034 = vmatpush.bf16.msra.mxu0 %v3097_v2  ;;  %v4608_v2 = vld [vmem:[#allocation2 + $0x5ec] sm:$0xf]  ;;  %v3574_v25 = vld [vmem:[#allocation2 + $0x458] sm:$0xf0] }
  0xe7   :  { %2048 = vmatpush.bf16.msra.mxu1 %v3225_v4  ;;  %v3033_v4 = vor.u32 %v4420_v51, %v3030_v52  ;;  %v4600_v40 = vld [vmem:[#allocation2 + $0x5ac] sm:$0xf]  ;;  %v4006_v51 = vld [vmem:[#allocation2 + $0x7b8] sm:$0xf0] }
  0xe8   :  { %2062 = vmatpush.bf16.msra.mxu2 %v3353_v5  ;;  %v3782_v5 = vld [vmem:[#allocation2 + $0x5f8] sm:$0xf0]  ;;  %v4632_v46 = vld [vmem:[#allocation2 + $0x6ac] sm:$0xf] }
  0xe9   :  { %2076 = vmatpush.bf16.msra.mxu3 %v3481_v11  ;;  %v3289_v11 = vor.u32 %v4484_v57, %v3286_v60  ;;  %v5099_v28 = vpop.f32.mrf.mxu0  ;;  %v4564_v55 = vld [vmem:[#allocation2 + $0x48c] sm:$0xf]  ;;  %v3734_v60 = vld [vmem:[#allocation2 + $0x598] sm:$0xf0] }
  0xea   :  { %2035 = vmatpush.bf16.msra.mxu0 %v3081_v18  ;;  %v5097_v18 = vpop.f32.mrf.mxu3  ;;  %v4628_v61 = vld [vmem:[#allocation2 + $0x68c] sm:$0xf] }
  0xeb   :  { %2049 = vmatpush.bf16.msra.mxu1 %v3209_v19  ;;  %v3785_v19 = vor.u32 %v4608_v2, %v3782_v5  ;;  %v4560_v5 = vld [vmem:[#allocation2 + $0x46c] sm:$0xf] }
  0xec   :  { %2063 = vmatpush.bf16.msra.mxu2 %v3337_v20  ;;  %v3913_v20 = vor.u32 %v4640_v6, %v3910_v7  ;;  %v3590_v6 = vld [vmem:[#allocation2 + $0x478] sm:$0xf0]  ;;  %v4592_v7 = vld [vmem:[#allocation2 + $0x56c] sm:$0xf] }
  0xed   :  { %2077 = vmatpush.bf16.msra.mxu3 %v3465_v24  ;;  %v4041_v24 = vor.u32 %v4672_v12, %v4038_v13  ;;  %v5107_v57 = vpop.f32.mrf.mxu2  ;;  %v3718_v12 = vld [vmem:[#allocation2 + $0x578] sm:$0xf0]  ;;  %v4624_v13 = vld [vmem:[#allocation2 + $0x66c] sm:$0xf] }
  0xee   :  { %2036 = vmatpush.bf16.msra.mxu0 %v3065_v31  ;;  %v4022_v31 = vld [vmem:[#allocation2 + $0x7d8] sm:$0xf0]  ;;  %v4588_v26 = vld [vmem:[#allocation2 + $0x54c] sm:$0xf] }
  0xef   :  { %2050 = vmatpush.bf16.msra.mxu1 %v3193_v33  ;;  %v5101_v33 = vpop.f32.mrf.mxu1  ;;  %v4025_v41 = vor.u32 %v4668_v29, %v4022_v31  ;;  %v3702_v29 = vld [vmem:[#allocation2 + $0x558] sm:$0xf0]  ;;  %v4620_v31 = vld [vmem:[#allocation2 + $0x64c] sm:$0xf] }
  0xf0   :  { %2064 = vmatpush.bf16.msra.mxu2 %v3321_v34  ;;  %v3641_v34 = vor.u32 %v4572_v21, %v3638_v22  ;;  %v3593_v21 = vor.u32 %v4560_v5, %v3590_v6  ;;  %v3721_v22 = vor.u32 %v4592_v7, %v3718_v12  ;;  %v3670_v5 = vld [vmem:[#allocation2 + $0x518] sm:$0xf0] }
  0xf1   :  { %2078 = vmatpush.bf16.msra.mxu3 %v3449_v38  ;;  %v3622_v38 = vld [vmem:[#allocation2 + $0x4b8] sm:$0xf0]  ;;  %v5111_v0 = vpop.f32.mrf.mxu0 }
  0xf2   :  { %2037 = vmatpush.bf16.msra.mxu0 %v3049_v50  ;;  %v4664_v50 = vld [vmem:[#allocation2 + $0x7ac] sm:$0xf]  ;;  %v3625_v52 = vor.u32 %v4568_v37, %v3622_v38  ;;  %v5109_v62 = vpop.f32.mrf.mxu3  ;;  %v3798_v12 = vld [vmem:[#allocation2 + $0x618] sm:$0xf0] }
  0xf3   :  { %2051 = vmatpush.bf16.msra.mxu1 %v3177_v53  ;;  %v3753_v53 = vor.u32 %v4600_v40, %v3750_v42  ;;  %v3705_v42 = vor.u32 %v4588_v26, %v3702_v29 }
  0xf4   :  { %2065 = vmatpush.bf16.msra.mxu2 %v3305_v54  ;;  %v3881_v54 = vor.u32 %v4632_v46, %v3878_v48 }
  0xf5   :  { %2079 = vmatpush.bf16.msra.mxu3 %v3433_v59  ;;  %v4009_v59 = vor.u32 %v4664_v50, %v4006_v51  ;;  %v5118_v38 = vpop.f32.mrf.mxu2  ;;  %v4552_v50 = vld [vmem:[#allocation2 + $0x42c] sm:$0xf]  ;;  %v3558_v51 = vld [vmem:[#allocation2 + $0x438] sm:$0xf0] }
  0xf6   :  { %2038 = vmatpush.bf16.msra.mxu0 %v3033_v4 }
  0xf7   :  { %2052 = vmatpush.bf16.msra.mxu1 %v3161_v8  ;;  %v5113_v8 = vpop.f32.mrf.mxu1 }
  0xf8   :  { %2066 = vmatpush.bf16.msra.mxu2 %v3289_v11 }
  0xf9   :  { %2080 = vmatpush.bf16.msra.mxu3 %v3417_v15  ;;  %2039 = vmatmul.bf16.vlgmr.msra.gmra.mxu0 %v5004_v58  ;;  %v3862_v58 = vld [vmem:[#allocation2 + $0x698] sm:$0xf0]  ;;  %v1816_v48 = vpop.f32.mrf.mxu0 }
  0xfa   :  { %2087 = vmatpush.bf16.msrb.mxu0 %v3657_v16  ;;  %2053 = vmatmul.bf16.vlgmr.msra.gmra.mxu1 %v5022_v10  ;;  %v3609_v10 = vor.u32 %v4564_v55, %v3606_v56  ;;  %v3865_v4 = vor.u32 %v4628_v61, %v3862_v58  ;;  %v3846_v15 = vld [vmem:[#allocation2 + $0x678] sm:$0xf0]  ;;  %v4656_v16 = vld [vmem:[#allocation2 + $0x76c] sm:$0xf]  ;;  %v3561_v58 = vor.u32 %v4552_v50, %v3558_v51 }
  0xfb   :  { %2101 = vmatpush.bf16.msrb.mxu1 %v3785_v19  ;;  %2067 = vmatmul.bf16.vlgmr.msra.gmra.mxu2 %v5009_v1  ;;  %v4596_v1 = vld [vmem:[#allocation2 + $0x58c] sm:$0xf]  ;;  %v3974_v19 = vld [vmem:[#allocation2 + $0x778] sm:$0xf0]  ;;  %v3849_v23 = vor.u32 %v4624_v13, %v3846_v15 }
  0xfc   :  { %2115 = vmatpush.bf16.msrb.mxu2 %v3913_v20  ;;  %2081 = vmatmul.bf16.vlgmr.msra.gmra.mxu3 %v5027_v17  ;;  %v4660_v17 = vld [vmem:[#allocation2 + $0x78c] sm:$0xf]  ;;  %v3737_v2 = vor.u32 %v4596_v1, %v3734_v60  ;;  %v5115_v20 = vld [vmem:[#allocation5] sm:$0xf]  ;;  %v3977_v27 = vor.u32 %v4656_v16, %v3974_v19  ;;  %v3814_v56 = vld [vmem:[#allocation2 + $0x638] sm:$0xf0] }
  0xfd   :  { %2129 = vmatpush.bf16.msrb.mxu3 %v4041_v24  ;;  %v3993_v11 = vor.u32 %v4660_v17, %v3990_v63  ;;  %v4556_v24 = vld [vmem:[#allocation2 + $0x44c] sm:$0xf]  ;;  %v367_v37 = vperm.slane %v5115_v20, 0  ;;  %v3942_v60 = vld [vmem:[#allocation2 + $0x738] sm:$0xf0]  ;;  %v368_v61 = vperm.slane %v5115_v20, 1 }
  0xfe   :  { %2088 = vmatpush.bf16.msrb.mxu0 %v3641_v34  ;;  %v3830_v34 = vld [vmem:[#allocation2 + $0x658] sm:$0xf0]  ;;  %v3577_v40 = vor.u32 %v4556_v24, %v3574_v25  ;;  %v4616_v55 = vld [vmem:[#allocation2 + $0x62c] sm:$0xf]  ;;  %v4100_v16 = vld [vmem:[#allocation7 + $0x70] sm:$0xf]  ;;  %v1844_v25 = vpop.f32.mrf.mxu2 }
  0xff   :  { %2102 = vmatpush.bf16.msrb.mxu1 %v3769_v35  ;;  %v4652_v35 = vld [vmem:[#allocation2 + $0x74c] sm:$0xf]  ;;  %v3833_v46 = vor.u32 %v4620_v31, %v3830_v34  ;;  %v1830_v1 = vpop.f32.mrf.mxu1  ;;  %v1705_v6 = vadd.f32 %v5083_v3, %v367_v37  ;;  %v3926_v15 = vld [vmem:[#allocation2 + $0x718] sm:$0xf0]  ;;  %v1817_v26 = vadd.f32 %v1816_v48, %v368_v61 }
 0x100   :  { %2116 = vmatpush.bf16.msrb.mxu2 %v3897_v36  ;;  %v3958_v36 = vld [vmem:[#allocation2 + $0x758] sm:$0xf0]  ;;  %v4548_v17 = vld [vmem:[#allocation2 + $0x40c] sm:$0xf] }
 0x101   :  { %2130 = vmatpush.bf16.msrb.mxu3 %v4025_v41  ;;  %v5120_v41 = vpop.f32.mrf.mxu3  ;;  %v4644_v13 = vld [vmem:[#allocation2 + $0x70c] sm:$0xf]  ;;  %v4690_v19 = vld [vmem:[#allocation7 + $0x74] sm:$0xf0]  ;;  %v1719_v31 = vadd.f32 %v5085_v9, %v1705_v6  ;;  %v1831_v51 = vadd.f32 %v1830_v1, %v1817_v26  ;;  %v4124_v26 = vld [vmem:[#allocation7 + $0xa0] sm:$0xf] }
 0x102   :  { %2089 = vmatpush.bf16.msrb.mxu0 %v3625_v52  ;;  %v4584_v52 = vld [vmem:[#allocation2 + $0x52c] sm:$0xf]  ;;  %v4706_v24 = vld [vmem:[#allocation7 + $0xf4] sm:$0xf0]  ;;  %v3929_v34 = vor.u32 %v4644_v13, %v3926_v15  ;;  %v4132_v15 = vld [vmem:[#allocation7 + $0xb0] sm:$0xf] }
 0x103   :  { %2103 = vmatpush.bf16.msrb.mxu1 %v3753_v53  ;;  %v3961_v53 = vor.u32 %v4652_v35, %v3958_v36  ;;  %v4101_v35 = vor.u32 %v4690_v19, %v4100_v16  ;;  %v4702_v1 = vld [vmem:[#allocation7 + $0xd4] sm:$0xf0] }
 0x104   :  { %2117 = vmatpush.bf16.msrb.mxu2 %v3881_v54  ;;  %v3686_v54 = vld [vmem:[#allocation2 + $0x538] sm:$0xf0] }
 0x105   :  { %2131 = vmatpush.bf16.msrb.mxu3 %v4009_v59  ;;  %v4648_v59 = vld [vmem:[#allocation2 + $0x72c] sm:$0xf]  ;;  %v3689_v63 = vor.u32 %v4584_v52, %v3686_v54  ;;  %v1733_v52 = vadd.f32 %v5087_v30, %v1719_v31  ;;  %v4682_v13 = vld [vmem:[#allocation7 + $0x34] sm:$0xf0] }
 0x106   :  { %2090 = vmatpush.bf16.msrb.mxu0 %v3609_v10  ;;  %v3817_v10 = vor.u32 %v4616_v55, %v3814_v56  ;;  %v3945_v7 = vor.u32 %v4648_v59, %v3942_v60  ;;  %v4084_v55 = vld [vmem:[#allocation7 + $0x50] sm:$0xf]  ;;  %v4686_v56 = vld [vmem:[#allocation7 + $0x54] sm:$0xf0]  ;;  %v1845_v60 = vadd.f32 %v1844_v25, %v1831_v51  ;;  %v4680_v25 = vld [vmem:[#allocation7 + $0x24] sm:$0xf0] }
 0x107   :  { %2104 = vmatpush.bf16.msrb.mxu1 %v3737_v2  ;;  %v3542_v2 = vld [vmem:[#allocation2 + $0x418] sm:$0xf0]  ;;  %v1832_v50 = vpop.f32.mrf.mxu1  ;;  %v1747_v30 = vadd.f32 %v5089_v32, %v1733_v52  ;;  %v4116_v51 = vld [vmem:[#allocation7 + $0x90] sm:$0xf] }
 0x108   :  { %2118 = vmatpush.bf16.msrb.mxu2 %v3865_v4  ;;  %v4580_v4 = vld [vmem:[#allocation2 + $0x50c] sm:$0xf]  ;;  %v4698_v16 = vld [vmem:[#allocation7 + $0xb4] sm:$0xf0] }
 0x109   :  { %2132 = vmatpush.bf16.msrb.mxu3 %v3993_v11  ;;  %v4612_v11 = vld [vmem:[#allocation2 + $0x60c] sm:$0xf]  ;;  %v1858_v29 = vpop.f32.mrf.mxu3  ;;  %v1761_v6 = vadd.f32 %v5099_v28, %v1747_v30  ;;  %v4133_v28 = vor.u32 %v4698_v16, %v4132_v15  ;;  %v4722_v31 = vld [vmem:[#allocation7 + $0x174] sm:$0xf0]  ;;  %v4108_v30 = vld [vmem:[#allocation7 + $0x80] sm:$0xf] }
 0x10a   :  { %2091 = vmatpush.bf16.msrb.mxu0 %v3593_v21  ;;  %v1707_v21 = vadd.f32 %v5091_v45, %v367_v37  ;;  %v3801_v3 = vor.u32 %v4612_v11, %v3798_v12  ;;  %v4688_v45 = vld [vmem:[#allocation7 + $0x64] sm:$0xf0]  ;;  %v4156_v37 = vld [vmem:[#allocation7 + $0xe0] sm:$0xf]  ;;  %v4068_v12 = vld [vmem:[#allocation7 + $0x30] sm:$0xf] }
 0x10b   :  { %2105 = vmatpush.bf16.msrb.mxu1 %v3721_v22  ;;  %v3545_v22 = vor.u32 %v4548_v17, %v3542_v2  ;;  %v4140_v2 = vld [vmem:[#allocation7 + $0xc0] sm:$0xf]  ;;  %v4716_v16 = vld [vmem:[#allocation7 + $0x144] sm:$0xf0] }
 0x10c   :  { %2119 = vmatpush.bf16.msrb.mxu2 %v3849_v23  ;;  %v4164_v23 = vld [vmem:[#allocation7 + $0xf0] sm:$0xf]  ;;  %v1721_v48 = vadd.f32 %v5093_v49, %v1707_v21  ;;  %v4204_v15 = vld [vmem:[#allocation7 + $0x140] sm:$0xf] }
 0x10d   :  { %2133 = vmatpush.bf16.msrb.mxu3 %v3977_v27  ;;  %v3673_v27 = vor.u32 %v4580_v4, %v3670_v5  ;;  %v4165_v36 = vor.u32 %v4706_v24, %v4164_v23  ;;  %v4148_v49 = vld [vmem:[#allocation7 + $0xd0] sm:$0xf]  ;;  %v1859_v5 = vadd.f32 %v1858_v29, %v1845_v60  ;;  %v4060_v24 = vld [vmem:[#allocation7 + $0x20] sm:$0xf] }
 0x10e   :  { %2092 = vmatpush.bf16.msrb.mxu0 %v3577_v40  ;;  %v1818_v40 = vpop.f32.mrf.mxu0  ;;  %v1735_v59 = vadd.f32 %v5095_v14, %v1721_v48  ;;  %v4149_v17 = vor.u32 %v4702_v1, %v4148_v49  ;;  %v4228_v29 = vld [vmem:[#allocation7 + $0x170] sm:$0xf]  ;;  %v4678_v48 = vld [vmem:[#allocation7 + $0x14] sm:$0xf0]  ;;  %v4044_v49 = vld [vmem:[#allocation7] sm:$0xf] }
 0x10f   :  { %2106 = vmatpush.bf16.msrb.mxu1 %v3705_v42  ;;  %v4092_v42 = vld [vmem:[#allocation7 + $0x60] sm:$0xf]  ;;  %v4676_v1 = vld [vmem:[#allocation7 + $0x4] sm:$0xf0] }
 0x110   :  { %2120 = vmatpush.bf16.msrb.mxu2 %v3833_v46  ;;  %v4704_v46 = vld [vmem:[#allocation7 + $0xe4] sm:$0xf0]  ;;  %v4093_v9 = vor.u32 %v4688_v45, %v4092_v42  ;;  %v1749_v4 = vadd.f32 %v5097_v18, %v1735_v59  ;;  %v4069_v18 = vor.u32 %v4682_v13, %v4068_v12  ;;  %v4061_v42 = vor.u32 %v4680_v25, %v4060_v24  ;;  %v4094_v13 = vld [vmem:[#allocation7 + $0x68] sm:$0xf0] }
 0x111   :  { %2134 = vmatpush.bf16.msrb.mxu3 %v3961_v53  ;;  %v1819_v53 = vadd.f32 %v1818_v40, %v368_v61  ;;  %v4157_v54 = vor.u32 %v4704_v46, %v4156_v37  ;;  %v4229_v40 = vor.u32 %v4722_v31, %v4228_v29  ;;  %v4685_v29 = vld [vmem:[#allocation7 + $0x54] sm:$0xf]  ;;  %v4086_v31 = vld [vmem:[#allocation7 + $0x58] sm:$0xf0] }
 0x112   :  { %2093 = vmatpush.bf16.msrb.mxu0 %v3561_v58  ;;  %v4085_v58 = vor.u32 %v4686_v56, %v4084_v55  ;;  %v1763_v19 = vadd.f32 %v5111_v0, %v1749_v4  ;;  %v4166_v4 = vld [vmem:[#allocation7 + $0xf8] sm:$0xf0] }
 0x113   :  { %2107 = vmatpush.bf16.msrb.mxu1 %v3689_v63  ;;  %v1833_v61 = vadd.f32 %v1832_v50, %v1819_v53  ;;  %v1860_v63 = vpop.f32.mrf.mxu3  ;;  %v4052_v50 = vld [vmem:[#allocation7 + $0x10] sm:$0xf]  ;;  %v4720_v53 = vld [vmem:[#allocation7 + $0x164] sm:$0xf0] }
 0x114   :  { %2121 = vmatpush.bf16.msrb.mxu2 %v3817_v10  ;;  %v4076_v10 = vld [vmem:[#allocation7 + $0x40] sm:$0xf] }
 0x115   :  { %2135 = vmatpush.bf16.msrb.mxu3 %v3945_v7 }
 0x116   :  { %2094 = vmatpush.bf16.msrb.mxu0 %v3545_v22  ;;  %v1872_v14 = vpop.f32.mrf.mxu0  ;;  %v1775_v22 = vadd.f32 %v5101_v33, %v1761_v6 }
 0x117   :  { %2108 = vmatpush.bf16.msrb.mxu1 %v3673_v27  ;;  %v1886_v32 = vpop.f32.mrf.mxu1  ;;  %v1873_v21 = vadd.f32 %v1872_v14, %v1859_v5 }
 0x118   :  { %2122 = vmatpush.bf16.msrb.mxu2 %v3801_v3  ;;  %v4696_v3 = vld [vmem:[#allocation7 + $0xa4] sm:$0xf0]  ;;  %v1789_v33 = vadd.f32 %v5107_v57, %v1775_v22  ;;  %v4053_v57 = vor.u32 %v4678_v48, %v4052_v50  ;;  %v4703_v22 = vld [vmem:[#allocation7 + $0xe4] sm:$0xf]  ;;  %v4142_v48 = vld [vmem:[#allocation7 + $0xc8] sm:$0xf0] }
 0x119   :  { %2136 = vmatpush.bf16.msrb.mxu3 %v3929_v34  ;;  %2095 = vmatmul.bf16.vlgmr.msrb.gmra.mxu0 %v5055_v39  ;;  %v1846_v39 = vpop.f32.mrf.mxu2  ;;  %v1777_v34 = vadd.f32 %v5113_v8, %v1763_v19  ;;  %v4125_v46 = vor.u32 %v4696_v3, %v4124_v26  ;;  %v4220_v8 = vld [vmem:[#allocation7 + $0x160] sm:$0xf]  ;;  %v4196_v26 = vld [vmem:[#allocation7 + $0x130] sm:$0xf]  ;;  %v4699_v50 = vld [vmem:[#allocation7 + $0xc4] sm:$0xf] }
 0x11a   :  { %2545 = vmatpush.bf16.msra.mxu0 %v4101_v35  ;;  %2109 = vmatmul.bf16.vlgmr.msrb.gmra.mxu1 %v5059_v44  ;;  %v4684_v44 = vld [vmem:[#allocation7 + $0x44] sm:$0xf0]  ;;  %v1847_v7 = vadd.f32 %v1846_v39, %v1833_v61  ;;  %v1887_v35 = vadd.f32 %v1886_v32, %v1873_v21  ;;  %v4221_v55 = vor.u32 %v4720_v53, %v4220_v8  ;;  %v4689_v39 = vld [vmem:[#allocation7 + $0x74] sm:$0xf]  ;;  %v4070_v8 = vld [vmem:[#allocation7 + $0x38] sm:$0xf0] }
 0x11b   :  { %2559 = vmatpush.bf16.msra.mxu1 %v4165_v36  ;;  %2123 = vmatmul.bf16.vlgmr.msrb.gmra.mxu2 %v5057_v43  ;;  %v4700_v43 = vld [vmem:[#allocation7 + $0xc4] sm:$0xf0]  ;;  %v1791_v45 = vadd.f32 %v5118_v38, %v1777_v34  ;;  %v1803_v56 = vadd.f32 %v5109_v62, %v1789_v33  ;;  %v4701_v34 = vld [vmem:[#allocation7 + $0xd4] sm:$0xf]  ;;  %v4089_v33 = vor.u32 %v4685_v29, %v4086_v31  ;;  %v4180_v53 = vld [vmem:[#allocation7 + $0x110] sm:$0xf] }
 0x11c   :  { %2137 = vmatmul.bf16.vlgmr.msrb.gmra.mxu3 %v5061_v47  ;;  %v4077_v47 = vor.u32 %v4684_v44, %v4076_v10  ;;  %v4141_v11 = vor.u32 %v4700_v43, %v4140_v2  ;;  %v1861_v23 = vadd.f32 %v1860_v63, %v1847_v7  ;;  %2573 = vmatpush.bf16.msra.mxu2 %v4229_v40  ;;  %v4212_v63 = vld [vmem:[#allocation7 + $0x150] sm:$0xf]  ;;  %v4718_v10 = vld [vmem:[#allocation7 + $0x154] sm:$0xf0]  ;;  %v4705_v43 = vld [vmem:[#allocation7 + $0xf4] sm:$0xf] }
 0x11d   :  { %v1805_v38 = vadd.f32 %v5120_v41, %v1791_v45  ;;  %v4213_v5 = vor.u32 %v4718_v10, %v4212_v63  ;;  %v2143_v14 = vmax.f32 %v1803_v56, 0.0  ;;  %v4045_v41 = vor.u32 %v4676_v1, %v4044_v49  ;;  %v4712_v40 = vld [vmem:[#allocation7 + $0x124] sm:$0xf0]  ;;  %v4683_v45 = vld [vmem:[#allocation7 + $0x44] sm:$0xf] }
 0x11e   :  { %2546 = vmatpush.bf16.msra.mxu0 %v4093_v9  ;;  %v1874_v36 = vpop.f32.mrf.mxu0  ;;  %v4694_v9 = vld [vmem:[#allocation7 + $0x94] sm:$0xf0]  ;;  %v4169_v12 = vor.u32 %v4705_v43, %v4166_v4  ;;  %v4134_v56 = vld [vmem:[#allocation7 + $0xb8] sm:$0xf0]  ;;  %v4679_v1 = vld [vmem:[#allocation7 + $0x24] sm:$0xf] }
 0x11f   :  { %2560 = vmatpush.bf16.msra.mxu1 %v4157_v54  ;;  %v1914_v0 = vpop.f32.mrf.mxu3  ;;  %v1875_v37 = vadd.f32 %v1874_v36, %v1861_v23  ;;  %v1888_v52 = vpop.f32.mrf.mxu1  ;;  %v4117_v60 = vor.u32 %v4694_v9, %v4116_v51  ;;  %v2147_v6 = vmax.f32 %v1805_v38, 0.0  ;;  %v4205_v23 = vor.u32 %v4716_v16, %v4204_v15  ;;  %v4150_v36 = vld [vmem:[#allocation7 + $0xd8] sm:$0xf0]  ;;  %v4062_v38 = vld [vmem:[#allocation7 + $0x28] sm:$0xf0] }
 0x120   :  { %2574 = vmatpush.bf16.msra.mxu2 %v4221_v55  ;;  %v4145_v9 = vor.u32 %v4699_v50, %v4142_v48  ;;  %v4697_v55 = vld [vmem:[#allocation7 + $0xb4] sm:$0xf]  ;;  %v4230_v63 = vld [vmem:[#allocation7 + $0x178] sm:$0xf0]  ;;  %v4046_v15 = vld [vmem:[#allocation7 + $0x8] sm:$0xf0] }
 0x121   :  { %v1900_v27 = vpop.f32.mrf.mxu2  ;;  %v1889_v59 = vadd.f32 %v1888_v52, %v1875_v37  ;;  %v4078_v37 = vld [vmem:[#allocation7 + $0x48] sm:$0xf0]  ;;  %v4681_v52 = vld [vmem:[#allocation7 + $0x34] sm:$0xf]  ;;  %v4054_v43 = vld [vmem:[#allocation7 + $0x18] sm:$0xf0] }
 0x122   :  { %2547 = vmatpush.bf16.msra.mxu0 %v4085_v58  ;;  %v1901_v54 = vadd.f32 %v1900_v27, %v1887_v35  ;;  %v4692_v58 = vld [vmem:[#allocation7 + $0x84] sm:$0xf0]  ;;  %v4714_v27 = vld [vmem:[#allocation7 + $0x134] sm:$0xf0]  ;;  %v4081_v51 = vor.u32 %v4683_v45, %v4078_v37  ;;  %v4073_v49 = vor.u32 %v4681_v52, %v4070_v8  ;;  %v4693_v4 = vld [vmem:[#allocation7 + $0x94] sm:$0xf] }
 0x123   :  { %2561 = vmatpush.bf16.msra.mxu1 %v4149_v17  ;;  %v4102_v17 = vld [vmem:[#allocation7 + $0x78] sm:$0xf0]  ;;  %v4109_v32 = vor.u32 %v4692_v58, %v4108_v30  ;;  %v4197_v35 = vor.u32 %v4714_v27, %v4196_v26  ;;  %v4172_v30 = vld [vmem:[#allocation7 + $0x100] sm:$0xf]  ;;  %v4708_v58 = vld [vmem:[#allocation7 + $0x104] sm:$0xf0] }
 0x124   :  { %v1915_v44 = vadd.f32 %v1914_v0, %v1901_v54  ;;  %v4105_v7 = vor.u32 %v4689_v39, %v4102_v17  ;;  %2575 = vmatpush.bf16.msra.mxu2 %v4213_v5  ;;  %v4188_v0 = vld [vmem:[#allocation7 + $0x120] sm:$0xf]  ;;  %v4710_v54 = vld [vmem:[#allocation7 + $0x114] sm:$0xf0]  ;;  %v4126_v39 = vld [vmem:[#allocation7 + $0xa8] sm:$0xf0] }
 0x125   :  { %v4721_v17 = vld [vmem:[#allocation7 + $0x174] sm:$0xf]  ;;  %v4691_v16 = vld [vmem:[#allocation7 + $0x84] sm:$0xf]  ;;  %v4206_v31 = vld [vmem:[#allocation7 + $0x148] sm:$0xf0] }
 0x126   :  { %2548 = vmatpush.bf16.msra.mxu0 %v4077_v47  ;;  %v2144_v19 = vmax.f32 %v1915_v44, 0.0  ;;  %v4233_v10 = vor.u32 %v4721_v17, %v4230_v63  ;;  %v4065_v44 = vor.u32 %v4679_v1, %v4062_v38  ;;  %v4715_v29 = vld [vmem:[#allocation7 + $0x144] sm:$0xf]  ;;  %v4190_v37 = vld [vmem:[#allocation7 + $0x128] sm:$0xf0] }
 0x127   :  { %2562 = vmatpush.bf16.msra.mxu1 %v4141_v11  ;;  %v1916_v62 = vpop.f32.mrf.mxu3  ;;  %v4687_v11 = vld [vmem:[#allocation7 + $0x64] sm:$0xf]  ;;  %v4709_v52 = vld [vmem:[#allocation7 + $0x114] sm:$0xf]  ;;  %v4174_v1 = vld [vmem:[#allocation7 + $0x108] sm:$0xf0] }
 0x128   :  { %v4097_v25 = vor.u32 %v4687_v11, %v4094_v13  ;;  %2576 = vmatpush.bf16.msra.mxu2 %v4205_v23  ;;  %v4675_v13 = vld [vmem:[#allocation7 + $0x4] sm:$0xf]  ;;  %v4738_v38 = vld [vmem:[#allocation7 + $0x1f4] sm:$0xf0] }
 0x129   :  { %v1902_v61 = vpop.f32.mrf.mxu2  ;;  %v4049_v23 = vor.u32 %v4675_v13, %v4046_v15  ;;  %v4711_v45 = vld [vmem:[#allocation7 + $0x124] sm:$0xf] }
 0x12a   :  { %2549 = vmatpush.bf16.msra.mxu0 %v4069_v18  ;;  %v1903_v2 = vadd.f32 %v1902_v61, %v1889_v59  ;;  %v4158_v18 = vld [vmem:[#allocation7 + $0xe8] sm:$0xf0]  ;;  %v4137_v59 = vor.u32 %v4697_v55, %v4134_v56  ;;  %v4173_v61 = vor.u32 %v4708_v58, %v4172_v30  ;;  %v4193_v48 = vor.u32 %v4711_v45, %v4190_v37  ;;  %v4735_v45 = vld [vmem:[#allocation7 + $0x1e4] sm:$0xf] }
 0x12b   :  { %2563 = vmatpush.bf16.msra.mxu1 %v4133_v28  ;;  %v5143_v28 = vpack.c.bf16 %v2147_v6, %v2143_v14  ;;  %v4161_v3 = vor.u32 %v4703_v22, %v4158_v18  ;;  %v4118_v14 = vld [vmem:[#allocation7 + $0x98] sm:$0xf0]  ;;  %v4222_v6 = vld [vmem:[#allocation7 + $0x168] sm:$0xf0] }
 0x12c   :  { %v1917_v47 = vadd.f32 %v1916_v62, %v1903_v2  ;;  %2577 = vmatpush.bf16.msra.mxu2 %v4197_v35  ;;  %v4677_v62 = vld [vmem:[#allocation7 + $0x14] sm:$0xf]  ;;  %v4214_v22 = vld [vmem:[#allocation7 + $0x158] sm:$0xf0]  ;;  %v4286_v37 = vld [vmem:[#allocation7 + $0x1e8] sm:$0xf0] }
 0x12d   :  { %v4057_v11 = vor.u32 %v4677_v62, %v4054_v43  ;;  %v4734_v43 = vld [vmem:[#allocation7 + $0x1d4] sm:$0xf0] }
 0x12e   :  { %2550 = vmatpush.bf16.msra.mxu0 %v4061_v42  ;;  %v2148_v21 = vmax.f32 %v1917_v47, 0.0  ;;  %v4153_v42 = vor.u32 %v4701_v34, %v4150_v36  ;;  %v4209_v34 = vor.u32 %v4715_v29, %v4206_v31  ;;  %v4244_v29 = vld [vmem:[#allocation7 + $0x190] sm:$0xf]  ;;  %v4726_v31 = vld [vmem:[#allocation7 + $0x194] sm:$0xf0] }
 0x12f   :  { %2564 = vmatpush.bf16.msra.mxu1 %v4125_v46  ;;  %v4189_v46 = vor.u32 %v4712_v40, %v4188_v0  ;;  %v4713_v40 = vld [vmem:[#allocation7 + $0x134] sm:$0xf] }
 0x130   :  { %v5145_v24 = vpack.c.bf16 %v2148_v21, %v2144_v19  ;;  %v4110_v19 = vld [vmem:[#allocation7 + $0x88] sm:$0xf0]  ;;  %v4717_v21 = vld [vmem:[#allocation7 + $0x154] sm:$0xf] }
 0x131   :  { %2578 = vmatpush.bf16.msra.mxu2 %v4189_v46  ;;  %v4217_v18 = vor.u32 %v4717_v21, %v4214_v22 }
 0x132   :  { %2551 = vmatpush.bf16.msra.mxu0 %v4053_v57  ;;  %v4181_v57 = vor.u32 %v4710_v54, %v4180_v53 }
 0x133   :  { %2565 = vmatpush.bf16.msra.mxu1 %v4117_v60  ;;  %v4695_v60 = vld [vmem:[#allocation7 + $0xa4] sm:$0xf] }
 0x134   :  { %v4129_v2 = vor.u32 %v4695_v60, %v4126_v39 }
 0x135   :  { %2579 = vmatpush.bf16.msra.mxu2 %v4181_v57  ;;  %v4292_v57 = vld [vmem:[#allocation7 + $0x1f0] sm:$0xf] }
 0x136   :  { %2552 = vmatpush.bf16.msra.mxu0 %v4045_v41  ;;  %v1928_v5 = vpop.f32.mrf.mxu0  ;;  %v4719_v41 = vld [vmem:[#allocation7 + $0x164] sm:$0xf] }
 0x137   :  { %2566 = vmatpush.bf16.msra.mxu1 %v4109_v32  ;;  %v1942_v47 = vpop.f32.mrf.mxu1  ;;  %v4225_v32 = vor.u32 %v4719_v41, %v4222_v6  ;;  %v4268_v6 = vld [vmem:[#allocation7 + $0x1c0] sm:$0xf] }
 0x139   :  { %2553 = vmatmul.bf16.vlgmr.msra.gmra.mxu0 %v5143_v28  ;;  %2580 = vmatpush.bf16.msra.mxu2 %v4173_v61 }
 0x13a   :  { %2601 = vmatpush.bf16.msrb.mxu0 %v4105_v7  ;;  %2567 = vmatmul.bf16.vlgmr.msra.gmra.mxu1 %v5145_v24  ;;  %v369_v7 = vperm.slane %v5115_v20, 2 }
 0x13b   :  { %2615 = vmatpush.bf16.msrb.mxu1 %v4169_v12  ;;  %v4121_v12 = vor.u32 %v4693_v4, %v4118_v14 }
 0x13c   :  { %v1929_v27 = vadd.f32 %v1928_v5, %v369_v7 }
 0x13d   :  { %2629 = vmatpush.bf16.msrb.mxu2 %v4233_v10  ;;  %v4284_v10 = vld [vmem:[#allocation7 + $0x1e0] sm:$0xf] }
 0x13e   :  { %2602 = vmatpush.bf16.msrb.mxu0 %v4097_v25  ;;  %v4113_v25 = vor.u32 %v4691_v16, %v4110_v19  ;;  %v1956_v26 = vpop.f32.mrf.mxu2  ;;  %v1930_v35 = vpop.f32.mrf.mxu0  ;;  %v1943_v0 = vadd.f32 %v1942_v47, %v1929_v27  ;;  %v4732_v47 = vld [vmem:[#allocation7 + $0x1c4] sm:$0xf0]  ;;  %v4260_v16 = vld [vmem:[#allocation7 + $0x1b0] sm:$0xf]  ;;  %v4730_v19 = vld [vmem:[#allocation7 + $0x1b4] sm:$0xf0] }
 0x13f   :  { %2616 = vmatpush.bf16.msrb.mxu1 %v4161_v3  ;;  %v1970_v3 = vpop.f32.mrf.mxu3  ;;  %v1944_v36 = vpop.f32.mrf.mxu1  ;;  %v1931_v46 = vadd.f32 %v1930_v35, %v369_v7  ;;  %v4261_v22 = vor.u32 %v4730_v19, %v4260_v16  ;;  %v4236_v35 = vld [vmem:[#allocation7 + $0x180] sm:$0xf] }
 0x140   :  { %v1957_v50 = vadd.f32 %v1956_v26, %v1943_v0  ;;  %v4728_v26 = vld [vmem:[#allocation7 + $0x1a4] sm:$0xf0] }
 0x141   :  { %2630 = vmatpush.bf16.msrb.mxu2 %v4225_v32  ;;  %v1945_v8 = vadd.f32 %v1944_v36, %v1931_v46  ;;  %v4724_v36 = vld [vmem:[#allocation7 + $0x184] sm:$0xf0]  ;;  %v4289_v46 = vor.u32 %v4735_v45, %v4286_v37  ;;  %v4753_v45 = vld [vmem:[#allocation8 + $0x70] sm:$0xff] }
 0x142   :  { %2603 = vmatpush.bf16.msrb.mxu0 %v4089_v33  ;;  %v4198_v33 = vld [vmem:[#allocation7 + $0x138] sm:$0xf0]  ;;  %v1971_v54 = vadd.f32 %v1970_v3, %v1957_v50  ;;  %v4237_v0 = vor.u32 %v4724_v36, %v4236_v35  ;;  %v4745_v35 = vld [vmem:[#allocation8 + $0x30] sm:$0xff]  ;;  %v4744_v36 = vld [vmem:[#allocation8 + $0x28] sm:$0xff] }
 0x143   :  { %2617 = vmatpush.bf16.msrb.mxu1 %v4153_v42  ;;  %v4201_v42 = vor.u32 %v4713_v40, %v4198_v33  ;;  %v4737_v40 = vld [vmem:[#allocation7 + $0x1f4] sm:$0xf]  ;;  %v4294_v33 = vld [vmem:[#allocation7 + $0x1f8] sm:$0xf0]  ;;  %v4740_v37 = vld [vmem:[#allocation8 + $0x8] sm:$0xff] }
 0x145   :  { %2631 = vmatpush.bf16.msrb.mxu2 %v4217_v18 }
 0x146   :  { %2604 = vmatpush.bf16.msrb.mxu0 %v4081_v51  ;;  %v1958_v51 = vpop.f32.mrf.mxu2 }
 0x147   :  { %2618 = vmatpush.bf16.msrb.mxu1 %v4145_v9  ;;  %v4182_v9 = vld [vmem:[#allocation7 + $0x118] sm:$0xf0]  ;;  %v1972_v53 = vpop.f32.mrf.mxu3 }
 0x148   :  { %v4185_v56 = vor.u32 %v4709_v52, %v4182_v9 }
 0x149   :  { %2632 = vmatpush.bf16.msrb.mxu2 %v4209_v34  ;;  %v4245_v34 = vor.u32 %v4726_v31, %v4244_v29 }
 0x14a   :  { %2605 = vmatpush.bf16.msrb.mxu0 %v4073_v49  ;;  %v4707_v49 = vld [vmem:[#allocation7 + $0x104] sm:$0xf] }
 0x14b   :  { %2619 = vmatpush.bf16.msrb.mxu1 %v4137_v59  ;;  %v1959_v59 = vadd.f32 %v1958_v51, %v1945_v8  ;;  %v4177_v30 = vor.u32 %v4707_v49, %v4174_v1  ;;  %v4278_v51 = vld [vmem:[#allocation7 + $0x1d8] sm:$0xf0]  ;;  %v4731_v8 = vld [vmem:[#allocation7 + $0x1c4] sm:$0xf] }
 0x14c   :  { %v4262_v49 = vld [vmem:[#allocation7 + $0x1b8] sm:$0xf0] }
 0x14d   :  { %2633 = vmatpush.bf16.msrb.mxu2 %v4201_v42  ;;  %v1973_v58 = vadd.f32 %v1972_v53, %v1959_v59  ;;  %v4297_v42 = vor.u32 %v4737_v40, %v4294_v33  ;;  %v4270_v53 = vld [vmem:[#allocation7 + $0x1c8] sm:$0xf0]  ;;  %v4742_v40 = vld [vmem:[#allocation8 + $0x18] sm:$0xff] }
 0x14e   :  { %2606 = vmatpush.bf16.msrb.mxu0 %v4065_v44  ;;  %v4736_v44 = vld [vmem:[#allocation7 + $0x1e4] sm:$0xf0]  ;;  %v4754_v33 = vld [vmem:[#allocation8 + $0x78] sm:$0xff] }
 0x14f   :  { %2620 = vmatpush.bf16.msrb.mxu1 %v4129_v2  ;;  %v4276_v2 = vld [vmem:[#allocation7 + $0x1d0] sm:$0xf]  ;;  %v4285_v62 = vor.u32 %v4736_v44, %v4284_v10 }
 0x150   :  { %v4277_v14 = vor.u32 %v4734_v43, %v4276_v2 }
 0x151   :  { %2634 = vmatpush.bf16.msrb.mxu2 %v4193_v48  ;;  %v4733_v48 = vld [vmem:[#allocation7 + $0x1d4] sm:$0xf] }
 0x152   :  { %2607 = vmatpush.bf16.msrb.mxu0 %v4057_v11  ;;  %v4269_v11 = vor.u32 %v4732_v47, %v4268_v6  ;;  %v4281_v52 = vor.u32 %v4733_v48, %v4278_v51  ;;  %v4751_v48 = vld [vmem:[#allocation8 + $0x60] sm:$0xff]  ;;  %v4750_v51 = vld [vmem:[#allocation8 + $0x58] sm:$0xff] }
 0x153   :  { %2621 = vmatpush.bf16.msrb.mxu1 %v4121_v12 }
 0x155   :  { %2635 = vmatpush.bf16.msrb.mxu2 %v4185_v56 }
 0x156   :  { %2608 = vmatpush.bf16.msrb.mxu0 %v4049_v23  ;;  %v1984_v55 = vpop.f32.mrf.mxu0 }
 0x157   :  { %2622 = vmatpush.bf16.msrb.mxu1 %v4113_v25  ;;  %v1985_v60 = vadd.f32 %v1984_v55, %v1971_v54  ;;  %v4252_v25 = vld [vmem:[#allocation7 + $0x1a0] sm:$0xf]  ;;  %v370_v54 = vperm.slane %v5115_v20, 3  ;;  %v4273_v55 = vor.u32 %v4731_v8, %v4270_v53  ;;  %v4246_v20 = vld [vmem:[#allocation7 + $0x198] sm:$0xf0]  ;;  %v4748_v53 = vld [vmem:[#allocation8 + $0x48] sm:$0xff] }
 0x158   :  { %v4253_v3 = vor.u32 %v4728_v26, %v4252_v25 }
 0x159   :  { %2609 = vmatmul.bf16.vlgmr.msrb.gmra.mxu0 %v5143_v28  ;;  %v1998_v28 = vpop.f32.mrf.mxu1  ;;  %2636 = vmatpush.bf16.msrb.mxu2 %v4177_v30 }
 0x15a   :  { %2623 = vmatmul.bf16.vlgmr.msrb.gmra.mxu1 %v5145_v24  ;;  %v4293_v24 = vor.u32 %v4738_v38, %v4292_v57  ;;  %v1999_v61 = vadd.f32 %v1998_v28, %v1985_v60  ;;  %v4729_v28 = vld [vmem:[#allocation7 + $0x1b4] sm:$0xf]  ;;  %v4254_v60 = vld [vmem:[#allocation7 + $0x1a8] sm:$0xf0] }
 0x15b   :  { %v4265_v59 = vor.u32 %v4729_v28, %v4262_v49  ;;  %2809 = vmatpush.bf16.msra.mxu1 %v4754_v33 }
 0x15c   :  { %2587 = vmatpush.bf16.msra.mxu3 %v4293_v24  ;;  %v4727_v24 = vld [vmem:[#allocation7 + $0x1a4] sm:$0xf] }
 0x15d   :  { %v4257_v30 = vor.u32 %v4727_v24, %v4254_v60 }
 0x15e   :  { %v2012_v39 = vpop.f32.mrf.mxu2  ;;  %v1986_v17 = vpop.f32.mrf.mxu0 }
 0x15f   :  { %v2026_v63 = vpop.f32.mrf.mxu3  ;;  %v1987_v4 = vadd.f32 %v1986_v17, %v1973_v58  ;;  %v2013_v41 = vadd.f32 %v2012_v39, %v1999_v61  ;;  %2810 = vmatpush.bf16.msra.mxu1 %v4753_v45 }
 0x160   :  { %2588 = vmatpush.bf16.msra.mxu3 %v4285_v62 }
 0x161   :  { %v2000_v5 = vpop.f32.mrf.mxu1  ;;  %v2027_v12 = vadd.f32 %v2026_v63, %v2013_v41  ;;  %v4725_v63 = vld [vmem:[#allocation7 + $0x194] sm:$0xf] }
 0x162   :  { %v2001_v32 = vadd.f32 %v2000_v5, %v1987_v4  ;;  %v4249_v43 = vor.u32 %v4725_v63, %v4246_v20  ;;  %v4723_v4 = vld [vmem:[#allocation7 + $0x184] sm:$0xf]  ;;  %v4238_v5 = vld [vmem:[#allocation7 + $0x188] sm:$0xf0] }
 0x163   :  { %v2145_v18 = vmax.f32 %v2027_v12, 0.0 }
 0x164   :  { %2589 = vmatpush.bf16.msra.mxu3 %v4277_v14  ;;  %v4241_v14 = vor.u32 %v4723_v4, %v4238_v5 }
 0x166   :  { %v2014_v7 = vpop.f32.mrf.mxu2 }
 0x167   :  { %v2015_v13 = vadd.f32 %v2014_v7, %v2001_v32  ;;  %v2028_v15 = vpop.f32.mrf.mxu3 }
 0x168   :  { %2590 = vmatpush.bf16.msra.mxu3 %v4269_v11 }
 0x169   :  { %v2029_v21 = vadd.f32 %v2028_v15, %v2015_v13 }
 0x16b   :  { %v2149_v23 = vmax.f32 %v2029_v21, 0.0 }
 0x16c   :  { %2591 = vmatpush.bf16.msra.mxu3 %v4261_v22 }
 0x16d   :  { %v2153_v27 = vpack.c.bf16 %v2149_v23, %v2145_v18 }
 0x16f   :  { %2581 = vmatmul.bf16.vlgmr.msra.gmra.mxu2 %v2153_v27 }
 0x170   :  { %2592 = vmatpush.bf16.msra.mxu3 %v4253_v3 }
 0x174   :  { %2593 = vmatpush.bf16.msra.mxu3 %v4245_v34  ;;  %v4746_v34 = vld [vmem:[#allocation8 + $0x38] sm:$0xff] }
 0x175   :  { %2795 = vmatpush.bf16.msra.mxu0 %v4746_v34  ;;  %v4755_v34 = vld [vmem:[%s5214_s7] sm:$0xff] }
 0x176   :  { %v2040_v50 = vpop.f32.mrf.mxu0 }
 0x177   :  { %v2054_v9 = vpop.f32.mrf.mxu1  ;;  %v2041_v1 = vadd.f32 %v2040_v50, %v370_v54  ;;  %v4739_v50 = vld [vmem:[#allocation8] sm:$0xff] }
 0x178   :  { %2594 = vmatpush.bf16.msra.mxu3 %v4237_v0  ;;  %v4743_v0 = vld [vmem:[#allocation8 + $0x20] sm:$0xff] }
 0x179   :  { %v2055_v39 = vadd.f32 %v2054_v9, %v2041_v1  ;;  %2796 = vmatpush.bf16.msra.mxu0 %v4745_v35  ;;  %v4749_v9 = vld [vmem:[#allocation8 + $0x50] sm:$0xff] }
 0x17a   :  { %v4766_v35 = vld [vmem:[%s5216_s9 + $0x18] sm:$0xff] }
 0x17c   :  { %2643 = vmatpush.bf16.msrb.mxu3 %v4297_v42  ;;  %v4741_v42 = vld [vmem:[#allocation8 + $0x10] sm:$0xff] }
 0x17d   :  { %2797 = vmatpush.bf16.msra.mxu0 %v4744_v36 }
 0x17e   :  { %v2068_v56 = vpop.f32.mrf.mxu2  ;;  %v2042_v38 = vpop.f32.mrf.mxu0 }
 0x17f   :  { %2637 = vmatmul.bf16.vlgmr.msrb.gmra.mxu2 %v2153_v27  ;;  %v2082_v57 = vpop.f32.mrf.mxu3  ;;  %v2056_v58 = vpop.f32.mrf.mxu1  ;;  %v2043_v61 = vadd.f32 %v2042_v38, %v370_v54  ;;  %v2069_v10 = vadd.f32 %v2068_v56, %v2055_v39  ;;  %v2219_v54 = vld [vmem:[%s5211_s4] sm:$0x3] }
 0x180   :  { %2644 = vmatpush.bf16.msrb.mxu3 %v4289_v46  ;;  %v4752_v46 = vld [vmem:[#allocation8 + $0x68] sm:$0xff]  ;;  %v2221_v56 = vperm.slane %v2219_v54, 0 }
 0x181   :  { %v2057_v44 = vadd.f32 %v2056_v58, %v2043_v61  ;;  %v2083_v6 = vadd.f32 %v2082_v57, %v2069_v10  ;;  %2798 = vmatpush.bf16.msra.mxu0 %v4743_v0  ;;  %2811 = vmatpush.bf16.msra.mxu1 %v4752_v46  ;;  %v4747_v57 = vld [vmem:[#allocation8 + $0x40] sm:$0xff] }
 0x184   :  { %2645 = vmatpush.bf16.msrb.mxu3 %v4281_v52 }
 0x185   :  { %2799 = vmatpush.bf16.msra.mxu0 %v4742_v40  ;;  %2812 = vmatpush.bf16.msra.mxu1 %v4751_v48  ;;  %v4778_v40 = vld [vmem:[%s5213_s6] ss:$0 sm:$0xff] }
 0x186   :  { %v2070_v17 = vpop.f32.mrf.mxu2 }
 0x187   :  { %v2084_v2 = vpop.f32.mrf.mxu3  ;;  %v2071_v47 = vadd.f32 %v2070_v17, %v2057_v44 }
 0x188   :  { %2646 = vmatpush.bf16.msrb.mxu3 %v4273_v55 }
 0x189   :  { %v2085_v11 = vadd.f32 %v2084_v2, %v2071_v47  ;;  %2800 = vmatpush.bf16.msra.mxu0 %v4741_v42  ;;  %2813 = vmatpush.bf16.msra.mxu1 %v4750_v51  ;;  %v2222_v2 = vperm.slane %v2219_v54, 1 }
 0x18c   :  { %2647 = vmatpush.bf16.msrb.mxu3 %v4265_v59 }
 0x18d   :  { %2801 = vmatpush.bf16.msra.mxu0 %v4740_v37  ;;  %2814 = vmatpush.bf16.msra.mxu1 %v4749_v9  ;;  %v4765_v9 = vld [vmem:[%s5216_s9 + $0x10] sm:$0xff] }
 0x190   :  { %2648 = vmatpush.bf16.msrb.mxu3 %v4257_v30 }
 0x191   :  { %2802 = vmatpush.bf16.msra.mxu0 %v4739_v50  ;;  %2815 = vmatpush.bf16.msra.mxu1 %v4748_v53  ;;  %v4763_v53 = vld [vmem:[%s5216_s9] sm:$0xff] }
 0x194   :  { %2649 = vmatpush.bf16.msrb.mxu3 %v4249_v43 }
 0x195   :  { %2816 = vmatpush.bf16.msra.mxu1 %v4747_v57 }
 0x196   :  { %v2096_v62 = vpop.f32.mrf.mxu0 }
 0x197   :  { %v2110_v41 = vpop.f32.mrf.mxu1  ;;  %v2097_v32 = vadd.f32 %v2096_v62, %v2083_v6 }
 0x198   :  { %2650 = vmatpush.bf16.msrb.mxu3 %v4241_v14 }
 0x199   :  { %v2111_v15 = vadd.f32 %v2110_v41, %v2097_v32 }
 0x19e   :  { %v2124_v7 = vpop.f32.mrf.mxu2  ;;  %v2098_v13 = vpop.f32.mrf.mxu0 }
 0x19f   :  { %v2138_v12 = vpop.f32.mrf.mxu3  ;;  %v2099_v16 = vadd.f32 %v2098_v13, %v2085_v11  ;;  %v2125_v19 = vadd.f32 %v2124_v7, %v2111_v15  ;;  %v2112_v21 = vpop.f32.mrf.mxu1 }
 0x1a1   :  { %v2113_v22 = vadd.f32 %v2112_v21, %v2099_v16  ;;  %v2139_v23 = vadd.f32 %v2138_v12, %v2125_v19 }
 0x1a3   :  { %v2146_v3 = vmax.f32 %v2139_v23, 0.0  ;;  %v4762_v23 = vld [vmem:[%s5214_s7 + $0x38] sm:$0xff] }
 0x1a4   :  { %2894 = vmatpush.bf16.msra.mxu2 %v4762_v23 }
 0x1a6   :  { %v2126_v18 = vpop.f32.mrf.mxu2 }
 0x1a7   :  { %v2127_v25 = vadd.f32 %v2126_v18, %v2113_v22  ;;  %v2140_v26 = vpop.f32.mrf.mxu3 }
 0x1a9   :  { %v2141_v27 = vadd.f32 %v2140_v26, %v2127_v25  ;;  %v4761_v25 = vld [vmem:[%s5214_s7 + $0x30] sm:$0xff]  ;;  %v4760_v26 = vld [vmem:[%s5214_s7 + $0x28] sm:$0xff] }
 0x1aa   :  { %2895 = vmatpush.bf16.msra.mxu2 %v4761_v25 }
 0x1ab   :  { %v2150_v29 = vmax.f32 %v2141_v27, 0.0  ;;  %v4759_v27 = vld [vmem:[%s5214_s7 + $0x20] sm:$0xff] }
 0x1ad   :  { %v2154_v31 = vpack.c.bf16 %v2150_v29, %v2146_v3  ;;  %v4758_v3 = vld [vmem:[%s5214_s7 + $0x18] sm:$0xff]  ;;  %v4757_v29 = vld [vmem:[%s5214_s7 + $0x10] sm:$0xff] }
 0x1ae   :  { %2896 = vmatpush.bf16.msra.mxu2 %v4760_v26 }
 0x1af   :  { %2595 = vmatmul.bf16.vlgmr.msra.gmra.mxu3 %v2154_v31 }
 0x1b0   :  { %2953 = vmatpush.bf16.msra.mxu3 %v4766_v35 }
 0x1b2   :  { %2897 = vmatpush.bf16.msra.mxu2 %v4759_v27 }
 0x1b4   :  { %2954 = vmatpush.bf16.msra.mxu3 %v4765_v9 }
 0x1b6   :  { %v2554_v52 = vpop.f32.mrf.mxu0  ;;  %2898 = vmatpush.bf16.msra.mxu2 %v4758_v3 }
 0x1b7   :  { %v2568_v55 = vpop.f32.mrf.mxu1  ;;  %v2555_v49 = vadd.f32 %v2554_v52, %v2221_v56 }
 0x1b9   :  { %v2569_v60 = vadd.f32 %v2568_v55, %v2555_v49  ;;  %v4779_v55 = vld [vmem:[%s5215_s8] ss:$0 sm:$0xff] }
 0x1ba   :  { %2899 = vmatpush.bf16.msra.mxu2 %v4757_v29 }
 0x1be   :  { %v2556_v28 = vpop.f32.mrf.mxu0 }
 0x1bf   :  { %2651 = vmatmul.bf16.vlgmr.msrb.gmra.mxu3 %v2154_v31  ;;  %v2557_v59 = vadd.f32 %v2556_v28, %v2221_v56  ;;  %v2570_v24 = vpop.f32.mrf.mxu1  ;;  %v4756_v31 = vld [vmem:[%s5214_s7 + $0x8] sm:$0xff] }
 0x1c0   :  { %2900 = vmatpush.bf16.msra.mxu2 %v4756_v31 }
 0x1c1   :  { %v2571_v58 = vadd.f32 %v2570_v24, %v2557_v59 }
 0x1c4   :  { %2901 = vmatpush.bf16.msra.mxu2 %v4755_v34 }
 0x1d6   :  { %v2610_v30 = vpop.f32.mrf.mxu0 }
 0x1d7   :  { %v2624_v10 = vpop.f32.mrf.mxu1  ;;  %v2611_v14 = vadd.f32 %v2610_v30, %v2222_v2 }
 0x1d9   :  { %v2625_v47 = vadd.f32 %v2624_v10, %v2611_v14 }
 0x1de   :  { %v2612_v5 = vpop.f32.mrf.mxu0 }
 0x1df   :  { %v2613_v6 = vadd.f32 %v2612_v5, %v2222_v2  ;;  %v2626_v32 = vpop.f32.mrf.mxu1 }
 0x1e1   :  { %v2627_v11 = vadd.f32 %v2626_v32, %v2613_v6 }
 0x1f2   :  { %v2582_v8 = vpop.f32.mrf.mxu2 }
 0x1f3   :  { %v2583_v39 = vadd.f32 %v2582_v8, %v2569_v60  ;;  %v4764_v8 = vld [vmem:[%s5216_s9 + $0x8] sm:$0xff]  ;;  %s4919_s9 = smov [#allocation10]  }
 0x1f4   :  { %2955 = vmatpush.bf16.msra.mxu3 %v4764_v8  ;;  %s2969_s1 = sshll.u32 %s4919_s9, 4  ;;  %s2970_s1 = int_to_ptr.vmem [resolvable:$true] %s2969_s1 }
 0x1f8   :  { %2956 = vmatpush.bf16.msra.mxu3 %v4763_v53 }
 0x1fa   :  { %v2584_v1 = vpop.f32.mrf.mxu2 }
 0x1fb   :  { %v2585_v61 = vadd.f32 %v2584_v1, %v2571_v58  ;;  %v4780_v1 = vld [vmem:[%s5217_s10] ss:$0 sm:$0xff] }
 0x202   :  { %v2638_v44 = vpop.f32.mrf.mxu2 }
 0x203   :  { %v2639_v12 = vadd.f32 %v2638_v44, %v2625_v47 }
 0x20a   :  { %v2640_v7 = vpop.f32.mrf.mxu2 }
 0x20b   :  { %v2641_v13 = vadd.f32 %v2640_v7, %v2627_v11 }
 0x232   :  { %v2596_v38 = vpop.f32.mrf.mxu3 }
 0x233   :  { %v2597_v17 = vadd.f32 %v2596_v38, %v2583_v39 }
 0x235   :  { %v2657_v62 = vmax.f32 %v2597_v17, 0.0 }
 0x23a   :  { %v2598_v63 = vpop.f32.mrf.mxu3 }
 0x23b   :  { %v2599_v20 = vadd.f32 %v2598_v63, %v2585_v61 }
 0x23d   :  { %v2659_v43 = vmax.f32 %v2599_v20, 0.0 }
 0x23f   :  { %v2661_v4 = vpack.c.bf16 %v2659_v43, %v2657_v62 }
 0x241   :  { %2803 = vmatmul.bf16.vlgmr.msra.gmra.mxu0 %v2661_v4 }
 0x242   :  { %v2652_v41 = vpop.f32.mrf.mxu3 }
 0x243   :  { %v2653_v15 = vadd.f32 %v2652_v41, %v2639_v12 }
 0x245   :  { %v2658_v21 = vmax.f32 %v2653_v15, 0.0 }
 0x24a   :  { %v2654_v16 = vpop.f32.mrf.mxu3 }
 0x24b   :  { %v2655_v19 = vadd.f32 %v2654_v16, %v2641_v13 }
 0x24d   :  { %v2660_v22 = vmax.f32 %v2655_v19, 0.0 }
 0x24f   :  { %v2662_v18 = vpack.c.bf16 %v2660_v22, %v2658_v21 }
 0x251   :  { %2817 = vmatmul.bf16.vlgmr.msra.gmra.mxu1 %v2662_v18 }
 0x2be   :  { %v2804_v36 = vpop.f32.mrf.mxu0 }
 0x2bf   :  { %v2805_v42 = vadd.f32 %v4778_v40, %v2804_v36 }
 0x2c6   :  { %v2806_v33 = vpop.f32.mrf.mxu0 }
 0x2c7   :  { %v2807_v45 = vadd.f32 %v4778_v40, %v2806_v33 }
 0x2ce   :  { %v2818_v0 = vpop.f32.mrf.mxu1 }
 0x2cf   :  { %v2819_v37 = vadd.f32 %v2818_v0, %v2805_v42 }
 0x2d1   :  { %v2823_v48 = vmax.f32 %v2819_v37, 0.0 }
 0x2d6   :  { %v2820_v46 = vpop.f32.mrf.mxu1 }
 0x2d7   :  { %v2821_v50 = vadd.f32 %v2820_v46, %v2807_v45 }
 0x2d9   :  { %v2824_v51 = vmax.f32 %v2821_v50, 0.0 }
 0x2db   :  { %v2825_v52 = vpack.c.bf16 %v2824_v51, %v2823_v48 }
 0x2dd   :  { %2902 = vmatmul.bf16.vlgmr.msra.gmra.mxu2 %v2825_v52 }
 0x360   :  { %v2903_v54 = vpop.f32.mrf.mxu2 }
 0x361   :  { %v2904_v57 = vadd.f32 %v4779_v55, %v2903_v54 }
 0x368   :  { %v2905_v56 = vpop.f32.mrf.mxu2 }
 0x369   :  { %v2906_v28 = vadd.f32 %v4779_v55, %v2905_v56 }
 0x36b   :  { %v2908_v49 = vpack.c.bf16 %v2906_v28, %v2904_v57 }
 0x36d   :  { %4410 = vmatmul.msk.bf16.vlgmr.msra.gmra.mxu3 %vm2945_vm0, %v2908_v49 }
 0x3f0   :  { %v2958_v38 = vpop.f32.mrf.mxu3 }
 0x3f1   :  { %v2959_v59 = vadd.f32 %v4780_v1, %v2958_v38 }
 0x3f3   :  { %2963 = vst [vmem:[#allocation10] sm:$0xff] %v2959_v59 }
 0x3f8   :  { %v2960_v24 = vpop.f32.mrf.mxu3 }
 0x3f9   :  { %v2961_v60 = vadd.f32 %v4780_v1, %v2960_v24 }
 0x3fb   :  { %2964 = vst [vmem:[#allocation10 + $0x8] sm:$0xff] %v2961_v60 }
 0x3fc   :  { %2977 = dma.vmem_to_hbm [thread:$0]  %s2970_s1, 256, %s2972_s20, [#allocation4], %s4914_s16, %s4914_s16, %s4915_s17  }
 0x3fd   :  { %4907 = dma.done.wait [#allocation4], 256  }
 0x3fe   :  { %4908 = vsyncadd [#allocation4], 4294967040 }
 0x3ff   :  { %2982 = vsyncpa [#allocation3], 1 }
 0x400   :  { %2983 = vsyncpa [#allocation6], 1 }
 0x401   :  { %2984 = vsyncpa [#allocation9], 1 }
 0x402   :  { %2985 = vsyncpa [#allocation4], 1 }

</bundles_post_ra>
